<compile_context>
chip_gen: v7x
topology: tpu7x:2x2x1
jax: 0.10.0
libtpu: 0.0.40
codegen_flags: <defaults>
</compile_context>

<pallas_src>
import functools

import jax
import jax.numpy as jnp
from jax import lax
from jax.experimental import pallas as pl
from jax.experimental.pallas import tpu as pltpu


_INV_SQRT2 = 0.7071067811865476


# ---------------------------------------------------------------------------
# In-kernel math helpers (VPU / EUP / XLU only)
# ---------------------------------------------------------------------------

def _approx_recip(x):
    """1/x via EUP approximate reciprocal + one Newton step (divide off the VPU)."""
    r = pl.reciprocal(x, approx=True)
    return r * (2.0 - x * r)


def _erf(z):
    """erf via Abramowitz & Stegun 7.1.26 (|abs err| < 1.5e-7)."""
    p = 0.3275911
    a1, a2, a3, a4, a5 = (0.254829592, -0.284496736, 1.421413741,
                          -1.453152027, 1.061405429)
    az = jnp.abs(z)
    t = _approx_recip(1.0 + p * az)
    poly = ((((a5 * t + a4) * t + a3) * t + a2) * t + a1) * t
    e = 1.0 - poly * jnp.exp(-az * az)
    return jnp.where(z < 0.0, -e, e)


def _gelu_exact(v):
    """Exact (erf) GELU, matching F.gelu(approximate='none')."""
    return 0.5 * v * (1.0 + _erf(v * _INV_SQRT2))


def _total(v):
    """Full-tile reduction -> (1, 1): lane reduce (XLU) then sublane reduce."""
    return jnp.sum(jnp.sum(v, axis=1, keepdims=True), axis=0, keepdims=True)


# ---------------------------------------------------------------------------
# Fused whole-sample kernel: conv + GroupNorm(1, C) [+ residual GELU]
# ---------------------------------------------------------------------------

def _fused_kernel(xcol_ref, w_ref, g_ref, b_ref, *rest, h, w, k, cout, eps, residual):
    # xcol_ref : (1, h+2, w, k)  width-im2col'd zero-padded sample (k = 3*Cin)
    # w_ref    : (3, k, cout)    row taps (resident)
    # g_ref    : (1, cout)       GroupNorm gamma (f32, resident)
    # b_ref    : (1, cout)       GroupNorm beta  (f32, resident)
    # rest     : (xres_ref?, o_ref); xres_ref (1, h*w, cin) raw x; o_ref (1, h*w, cout)
    if residual:
        xres_ref, o_ref = rest
    else:
        (o_ref,) = rest
    rows = h * w

    # 3x3 conv as 3 MXU matmuls with K = 3*Cin (column taps folded into the
    # contraction); register (Python-value) f32 accumulation, no scratch, no zero-fill.
    acc = jnp.dot(xcol_ref[0, 0:h].reshape(rows, k), w_ref[0],
                  preferred_element_type=jnp.float32)
    acc = acc + jnp.dot(xcol_ref[0, 1:1 + h].reshape(rows, k), w_ref[1],
                        preferred_element_type=jnp.float32)
    acc = acc + jnp.dot(xcol_ref[0, 2:2 + h].reshape(rows, k), w_ref[2],
                        preferred_element_type=jnp.float32)

    # GroupNorm(num_groups=1): per-sample stats over all of (C, H, W), single read of
    # acc (var = E[v^2] - mean^2), affine folded into one VPU pass.
    inv_n = 1.0 / float(rows * cout)
    mean = _total(acc) * inv_n                       # (1, 1)
    var = _total(acc * acc) * inv_n - mean * mean    # biased variance (PyTorch)
    inv_std = lax.rsqrt(var + eps)                   # EUP
    a = g_ref[...] * inv_std                         # (1, cout)
    c = b_ref[...] - mean * a                        # (1, cout)
    y = acc * a + c                                  # (rows, cout)

    if residual:
        y = _gelu_exact(xres_ref[0].astype(jnp.float32) + y)

    o_ref[...] = y[None].astype(o_ref.dtype)


# ---------------------------------------------------------------------------
# Row-tiled two-pass path (for feature maps that do not fit VMEM)
# ---------------------------------------------------------------------------

def _conv_tile_kernel(w_ref, xcol_hbm, y_ref, ssum_ref, ssq_ref, xbuf, sem, *,
                      tile_h, w, k):
    # w_ref    : (3, k, cout)          resident row taps (k = 3*Cin)
    # xcol_hbm : (B, H+2, W, k) in HBM (memory_space=pl.ANY; manual halo DMA)
    # y_ref    : (1, tile_h*w, cout)   un-normalized conv output tile (f32)
    # ssum/ssq : (1, 1, 1) f32         per-sample running sum / sum of squares
    # xbuf     : VMEM (tile_h+2, w, k) halo row window; sem: DMA semaphore
    b = pl.program_id(0)
    t = pl.program_id(1)

    row0 = t * tile_h
    cp = pltpu.make_async_copy(xcol_hbm.at[b, pl.ds(row0, tile_h + 2)], xbuf, sem)
    cp.start()
    cp.wait()
    # TODO(synk): double-buffer this halo fetch (prefetch tile t+1 during compute).

    rows = tile_h * w
    acc = jnp.dot(xbuf[0:tile_h].reshape(rows, k), w_ref[0],
                  preferred_element_type=jnp.float32)
    acc = acc + jnp.dot(xbuf[1:1 + tile_h].reshape(rows, k), w_ref[1],
                        preferred_element_type=jnp.float32)
    acc = acc + jnp.dot(xbuf[2:2 + tile_h].reshape(rows, k), w_ref[2],
                        preferred_element_type=jnp.float32)

    @pl.when(t == 0)
    def _():
        ssum_ref[...] = jnp.zeros_like(ssum_ref)
        ssq_ref[...] = jnp.zeros_like(ssq_ref)

    ssum_ref[...] += _total(acc).reshape(1, 1, 1)
    ssq_ref[...] += _total(acc * acc).reshape(1, 1, 1)
    y_ref[...] = acc[None]


def _norm_tile_kernel(y_ref, ssum_ref, ssq_ref, g_ref, b_ref, *rest, n, eps, residual):
    # y_ref: (1, rows, cout) f32; ssum/ssq: (1, 1, 1) f32; g/b: (1, cout) f32
    # rest : (xres_ref?, o_ref); xres_ref (1, rows, cin); o_ref (1, rows, cout)
    if residual:
        xres_ref, o_ref = rest
    else:
        (o_ref,) = rest
    inv_n = 1.0 / float(n)
    mean = ssum_ref[0] * inv_n                       # (1, 1)
    var = ssq_ref[0] * inv_n - mean * mean
    inv_std = lax.rsqrt(var + eps)
    a = g_ref[...] * inv_std                         # (1, cout)
    c = b_ref[...] - mean * a
    y = y_ref[0] * a + c                             # (rows, cout)
    if residual:
        y = _gelu_exact(xres_ref[0].astype(jnp.float32) + y)
    o_ref[...] = y[None].astype(o_ref.dtype)


# ---------------------------------------------------------------------------
# Wrapper-side helpers
# ---------------------------------------------------------------------------

def _padded_bytes(shape, itemsize):
    """Bytes of a VMEM tile after (8, 128) padding of the last two dims."""
    if len(shape) == 1:
        lead, s, l = 1, 1, shape[0]
    else:
        *lead_dims, s, l = shape
        lead = 1
        for d in lead_dims:
            lead *= int(d)
    return lead * (-(-int(s) // 8) * 8) * (-(-int(l) // 128) * 128) * itemsize


def _vmem_budget_bytes():
    """Per-generation VMEM budget with headroom (v5e/v6e: 128 MiB phys, v7x: 64 MiB)."""
    try:
        cap = int(pltpu.get_tpu_info().vmem_capacity_bytes)
    except Exception:  # pragma: no cover - non-TPU backends / older runtimes
        cap = 64 << 20
    return min(100 << 20, int(cap * 0.84))


def _resident_spec(block_shape, index_map):
    """Grid-invariant operand: fetched once; single-buffered when supported."""
    try:
        return pl.BlockSpec(block_shape, index_map, pipeline_mode=pl.Buffered(1))
    except (TypeError, AttributeError):  # older JAX without pipeline_mode / Buffered
        return pl.BlockSpec(block_shape, index_map)


def _auto_tile_h(H, W, K, Cin, Cout, residual, itemsize, budget):
    """Largest row-tile height that divides H, keeps (tile_h*W) % 8 == 0, and fits."""
    valid = [th for th in range(1, H + 1) if H % th == 0 and (th * W) % 8 == 0]
    if not valid:
        return None

    def need(th):
        rows = th * W
        p1 = (_padded_bytes((3, K, Cout), itemsize)
              + _padded_bytes((th + 2, W, K), itemsize)
              + 2 * _padded_bytes((1, rows, Cout), 4))
        p2 = 4 * _padded_bytes((1, rows, Cout), 4)
        if residual:
            p2 += 2 * _padded_bytes((1, rows, Cin), itemsize)
        return max(p1, p2)

    fitting = [th for th in valid if need(th) + (6 << 20) <= budget]
    return max(fitting) if fitting else min(valid)


# ---------------------------------------------------------------------------
# pallas_call builders
# ---------------------------------------------------------------------------

def _run_fused(x_col, w_k, g2, b2, x_res, *, B, H, W, K, Cin, Cout, eps, residual,
               out_dtype, vmem_limit):
    kernel = functools.partial(_fused_kernel, h=H, w=W, k=K, cout=Cout,
                               eps=eps, residual=residual)
    in_specs = [
        pl.BlockSpec((1, H + 2, W, K), lambda b: (b, 0, 0, 0)),
        _resident_spec((3, K, Cout), lambda b: (0, 0, 0)),
        _resident_spec((1, Cout), lambda b: (0, 0)),
        _resident_spec((1, Cout), lambda b: (0, 0)),
    ]
    args = [x_col, w_k, g2, b2]
    if residual:
        in_specs.append(pl.BlockSpec((1, H * W, Cin), lambda b: (b, 0, 0)))
        args.append(x_res)

    isz = jnp.dtype(x_col.dtype).itemsize
    osz = jnp.dtype(out_dtype).itemsize
    flops = 2 * B * H * W * Cout * 3 * K + 10 * B * H * W * Cout
    transc = (2 * B * H * W * Cout) if residual else B
    bytes_acc = (B * (H + 2) * W * K * isz + 3 * K * Cout * isz + 2 * Cout * 4
                 + B * H * W * Cout * osz
                 + (B * H * W * Cin * isz if residual else 0))

    return pl.pallas_call(
        kernel,
        out_shape=jax.ShapeDtypeStruct((B, H * W, Cout), out_dtype),
        grid_spec=pltpu.PrefetchScalarGridSpec(
            num_scalar_prefetch=0,
            grid=(B,),
            in_specs=in_specs,
            out_specs=pl.BlockSpec((1, H * W, Cout), lambda b: (b, 0, 0)),
        ),
        compiler_params=pltpu.CompilerParams(
            dimension_semantics=("parallel",),
            vmem_limit_bytes=int(vmem_limit)),
        cost_estimate=pl.CostEstimate(flops=int(flops), transcendentals=int(transc),
                                      bytes_accessed=int(bytes_acc)),
    )(*args)


def _run_tiled(x_col, w_k, g2, b2, x_res, *, B, H, W, K, Cin, Cout, tile_h, eps,
               residual, out_dtype, in_dtype, budget):
    T = H // tile_h
    rows = tile_h * W
    n = H * W * Cout
    isz = jnp.dtype(in_dtype).itemsize
    osz = jnp.dtype(out_dtype).itemsize

    # ---- pass 1: conv per row tile (manual halo DMA) + per-sample sum / sum-of-squares
    p1_need = (_padded_bytes((3, K, Cout), isz)
               + _padded_bytes((tile_h + 2, W, K), isz)
               + 2 * _padded_bytes((1, rows, Cout), 4)
               + 4 * _padded_bytes((1, 1, 1), 4))
    vmem1 = min(max(p1_need + (6 << 20), 16 << 20), budget)
    conv_kernel = functools.partial(_conv_tile_kernel, tile_h=tile_h, w=W, k=K)
    y, ssum, ssq = pl.pallas_call(
        conv_kernel,
        out_shape=(jax.ShapeDtypeStruct((B, H * W, Cout), jnp.float32),
                   jax.ShapeDtypeStruct((B, 1, 1), jnp.float32),
                   jax.ShapeDtypeStruct((B, 1, 1), jnp.float32)),
        grid_spec=pltpu.PrefetchScalarGridSpec(
            num_scalar_prefetch=0,
            grid=(B, T),
            in_specs=[
                _resident_spec((3, K, Cout), lambda b, t: (0, 0, 0)),
                pl.BlockSpec(memory_space=pl.ANY),      # x_col stays in HBM
            ],
            out_specs=(
                pl.BlockSpec((1, rows, Cout), lambda b, t: (b, t, 0)),
                pl.BlockSpec((1, 1, 1), lambda b, t: (b, 0, 0)),
                pl.BlockSpec((1, 1, 1), lambda b, t: (b, 0, 0)),
            ),
            scratch_shapes=[pltpu.VMEM((tile_h + 2, W, K), in_dtype),
                            pltpu.SemaphoreType.DMA],
        ),
        compiler_params=pltpu.CompilerParams(
            dimension_semantics=("parallel", "arbitrary"),
            vmem_limit_bytes=int(vmem1)),
        cost_estimate=pl.CostEstimate(
            flops=int(2 * B * H * W * Cout * 3 * K + 4 * B * H * W * Cout),
            transcendentals=0,
            bytes_accessed=int(B * (H + 2) * W * K * isz + 3 * K * Cout * isz
                               + B * H * W * Cout * 4)),
    )(w_k, x_col)

    # ---- pass 2: normalize + affine (+ residual GELU) per tile
    p2_need = (2 * _padded_bytes((1, rows, Cout), 4)
               + 2 * _padded_bytes((1, rows, Cout), osz)
               + 2 * _padded_bytes((1, Cout), 4)
               + 4 * _padded_bytes((1, 1, 1), 4))
    if residual:
        p2_need += 2 * _padded_bytes((1, rows, Cin), isz)
    vmem2 = min(max(p2_need + (6 << 20), 16 << 20), budget)
    norm_kernel = functools.partial(_norm_tile_kernel, n=n, eps=eps, residual=residual)
    in_specs = [
        pl.BlockSpec((1, rows, Cout), lambda b, t: (b, t, 0)),
        pl.BlockSpec((1, 1, 1), lambda b, t: (b, 0, 0)),
        pl.BlockSpec((1, 1, 1), lambda b, t: (b, 0, 0)),
        _resident_spec((1, Cout), lambda b, t: (0, 0)),
        _resident_spec((1, Cout), lambda b, t: (0, 0)),
    ]
    args = [y, ssum, ssq, g2, b2]
    if residual:
        in_specs.append(pl.BlockSpec((1, rows, Cin), lambda b, t: (b, t, 0)))
        args.append(x_res)
    out = pl.pallas_call(
        norm_kernel,
        out_shape=jax.ShapeDtypeStruct((B, H * W, Cout), out_dtype),
        grid_spec=pltpu.PrefetchScalarGridSpec(
            num_scalar_prefetch=0,
            grid=(B, T),
            in_specs=in_specs,
            out_specs=pl.BlockSpec((1, rows, Cout), lambda b, t: (b, t, 0)),
        ),
        compiler_params=pltpu.CompilerParams(
            dimension_semantics=("parallel", "parallel"),
            vmem_limit_bytes=int(vmem2)),
        cost_estimate=pl.CostEstimate(
            flops=int((14 if residual else 4) * B * H * W * Cout),
            transcendentals=int(2 * B * H * W * Cout) if residual else B,
            bytes_accessed=int(B * H * W * Cout * (4 + osz)
                               + (B * H * W * Cin * isz if residual else 0))),
    )(*args)
    return out


# ---------------------------------------------------------------------------
# Public entry point
# ---------------------------------------------------------------------------

def double_conv(x, conv_w, gamma, beta, *, residual=False, eps=1e-5,
                force_tiled=False, tile_h=None):
    """Pallas DoubleConv forward.

    x: (B, Cin, H, W) NCHW; conv_w: (Cout, Cin, 3, 3); gamma/beta: (Cout,).
    Returns (B, Cout, H, W) in x.dtype.
    """
    B, Cin, H, W = x.shape
    Cout = conv_w.shape[0]
    assert conv_w.shape == (Cout, Cin, 3, 3), conv_w.shape
    if residual:
        assert Cin == Cout, "residual path requires in_channels == out_channels"

    in_dtype = x.dtype
    out_dtype = x.dtype
    K = 3 * Cin
    itemsize = jnp.dtype(in_dtype).itemsize

    # ---- layout plumbing (wrapper side); MXU operands keep the model dtype.
    # TODO(synk): if the surrounding model is kept NHWC these transposes disappear.
    x_nhwc = jnp.transpose(x, (0, 2, 3, 1))                        # (B, H, W, Cin)
    x_pad = jnp.pad(x_nhwc, ((0, 0), (1, 1), (1, 1), (0, 0)))      # (B, H+2, W+2, Cin)
    # Width im2col: fold the 3 column taps onto channels -> aligned in-kernel slices
    # (leading-dim only) and K = 3*Cin for the MXU contraction.
    x_col = jnp.concatenate([x_pad[:, :, d:d + W, :] for d in range(3)], axis=-1)
    # (Cout, Cin, 3, 3) -> (3, 3*Cin, Cout): row tap dh; column tap folded into K.
    w_k = jnp.transpose(conv_w, (2, 3, 1, 0)).reshape(3, K, Cout).astype(in_dtype)
    g2 = gamma.reshape(1, Cout).astype(jnp.float32)
    b2 = beta.reshape(1, Cout).astype(jnp.float32)
    x_res = x_nhwc.reshape(B, H * W, Cin) if residual else None

    # ---- per-generation VMEM budget and fused-vs-tiled dispatch.
    budget = _vmem_budget_bytes()
    fused_need = (2 * _padded_bytes((1, H + 2, W, K), itemsize)
                  + 2 * _padded_bytes((1, H * W, Cout), jnp.dtype(out_dtype).itemsize)
                  + _padded_bytes((3, K, Cout), itemsize)
                  + 2 * _padded_bytes((1, Cout), 4))
    if residual:
        fused_need += 2 * _padded_bytes((1, H * W, Cin), itemsize)

    use_tiled = force_tiled or (fused_need + (6 << 20) > budget)
    th = tile_h
    if use_tiled and th is None:
        th = _auto_tile_h(H, W, K, Cin, Cout, residual, itemsize, budget)
        use_tiled = th is not None

    if use_tiled:
        if H % th != 0 or (th * W) % 8 != 0:
            raise ValueError(f"invalid tile_h={th} for H={H}, W={W}")
        out = _run_tiled(x_col, w_k, g2, b2, x_res, B=B, H=H, W=W, K=K, Cin=Cin,
                         Cout=Cout, tile_h=th, eps=eps, residual=residual,
                         out_dtype=out_dtype, in_dtype=in_dtype, budget=budget)
    else:
        vmem_limit = min(max(fused_need + (6 << 20), 16 << 20), budget)
        out = _run_fused(x_col, w_k, g2, b2, x_res, B=B, H=H, W=W, K=K, Cin=Cin,
                         Cout=Cout, eps=eps, residual=residual,
                         out_dtype=out_dtype, vmem_limit=vmem_limit)

    # (B, H*W, Cout) -> (B, Cout, H, W)  (NCHW, matching the PyTorch module)
    return out.reshape(B, H, W, Cout).transpose(0, 3, 1, 2)


# ---------------------------------------------------------------------------
# Pure-JAX reference and self-test
# ---------------------------------------------------------------------------

def reference_double_conv(x, conv_w, gamma, beta, *, residual=False, eps=1e-5):
    y = lax.conv_general_dilated(
        x, conv_w, window_strides=(1, 1), padding=((1, 1), (1, 1)),
        dimension_numbers=("NCHW", "OIHW", "NCHW"),
        precision=lax.Precision.HIGHEST)
    mean = jnp.mean(y, axis=(1, 2, 3), keepdims=True)
    var = jnp.mean((y - mean) ** 2, axis=(1, 2, 3), keepdims=True)
    yn = (y - mean) * lax.rsqrt(var + eps)
    yn = yn * gamma[None, :, None, None] + beta[None, :, None, None]
    if residual:
        return jax.nn.gelu(x + yn, approximate=False)
    return yn


if __name__ == "__main__":
    root = jax.random.PRNGKey(0)

    def run_case(key, cin, cout, residual, force_tiled, tile_h=None):
        k1, k2, k3, k4 = jax.random.split(key, 4)
        B, H, W = 2, 16, 16
        x = jax.random.normal(k1, (B, cin, H, W), jnp.float32)
        wconv = (jax.random.normal(k2, (cout, cin, 3, 3), jnp.float32)
                 * (2.0 / (cin * 9)) ** 0.5)
        gamma = 1.0 + 0.1 * jax.random.normal(k3, (cout,), jnp.float32)
        beta = 0.1 * jax.random.normal(k4, (cout,), jnp.float32)

        fn = jax.jit(lambda a, b, c, d: double_conv(
            a, b, c, d, residual=residual, force_tiled=force_tiled, tile_h=tile_h))
        out = jax.block_until_ready(fn(x, wconv, gamma, beta))
        ref = reference_double_conv(x, wconv, gamma, beta, residual=residual)
        assert out.shape == ref.shape, (out.shape, ref.shape)
        err = float(jnp.max(jnp.abs(out - ref)))
        assert err < 2e-3, (
            f"mismatch (residual={residual}, tiled={force_tiled}): max abs err {err}")

    keys = jax.random.split(root, 4)
    run_case(keys[0], 4, 8, residual=False, force_tiled=False)             # fused, Cin != Cout
    run_case(keys[1], 8, 8, residual=True, force_tiled=False)              # fused + residual GELU
    run_case(keys[2], 4, 8, residual=False, force_tiled=True, tile_h=4)    # tiled two-pass
    run_case(keys[3], 8, 8, residual=True, force_tiled=True, tile_h=4)     # tiled + residual
    print("KERNEL_OK")
</pallas_src>

<mosaic_0001>
module attributes {stable_mosaic.version = 11 : i64} {
  func.func @_fused_kernel(%arg0: i32, %arg1: memref<1x18x16x12xf32, #tpu.memory_space<vmem>>, %arg2: memref<3x12x8xf32, #tpu.memory_space<vmem>>, %arg3: memref<1x8xf32, #tpu.memory_space<vmem>>, %arg4: memref<1x8xf32, #tpu.memory_space<vmem>>, %arg5: memref<1x256x8xf32, #tpu.memory_space<vmem>>) attributes {dimension_semantics = [#tpu.dimension_semantics<parallel>], iteration_bounds = array<i64: 2>, scalar_prefetch = 0 : i64, scratch_operands = 0 : i64, tpu.core_type = #tpu.core_type<tc>, window_params = [{transform_indices = @transform_0, window_bounds = array<i64: 1, 18, 16, 12>}, {pipeline_mode = #tpu.pipeline_mode<synchronous>, transform_indices = @transform_1, window_bounds = array<i64: 3, 12, 8>}, {pipeline_mode = #tpu.pipeline_mode<synchronous>, transform_indices = @transform_2, window_bounds = array<i64: 1, 8>}, {pipeline_mode = #tpu.pipeline_mode<synchronous>, transform_indices = @transform_3, window_bounds = array<i64: 1, 8>}, {transform_indices = @transform_4, window_bounds = array<i64: 1, 256, 8>}]} {
    %c0 = arith.constant 0 : index
    %c0_0 = arith.constant 0 : index
    %c0_1 = arith.constant 0 : index
    %c0_2 = arith.constant 0 : index
    %0 = vector.load %arg1[%c0, %c0_0, %c0_1, %c0_2] : memref<1x18x16x12xf32, #tpu.memory_space<vmem>>, vector<1x16x16x12xf32>
    %1 = vector.shape_cast %0 : vector<1x16x16x12xf32> to vector<16x16x12xf32>
    %2 = vector.shape_cast %1 : vector<16x16x12xf32> to vector<256x12xf32>
    %c0_3 = arith.constant 0 : index
    %c0_4 = arith.constant 0 : index
    %c0_5 = arith.constant 0 : index
    %3 = vector.load %arg2[%c0_3, %c0_4, %c0_5] : memref<3x12x8xf32, #tpu.memory_space<vmem>>, vector<1x12x8xf32>
    %4 = vector.shape_cast %3 : vector<1x12x8xf32> to vector<12x8xf32>
    %cst = arith.constant dense<0.000000e+00> : vector<256x8xf32>
    %5 = tpu.matmul %2, %4, %cst {dimension_numbers = #tpu.dot_dimension_numbers<[1], [0], [0], [1], [0, 0, 1, 1], [], []>} : vector<256x12xf32>, vector<12x8xf32>, vector<256x8xf32> -> vector<256x8xf32>
    %c0_6 = arith.constant 0 : index
    %c1 = arith.constant 1 : index
    %c0_7 = arith.constant 0 : index
    %c0_8 = arith.constant 0 : index
    %6 = vector.load %arg1[%c0_6, %c1, %c0_7, %c0_8] : memref<1x18x16x12xf32, #tpu.memory_space<vmem>>, vector<1x16x16x12xf32>
    %7 = vector.shape_cast %6 : vector<1x16x16x12xf32> to vector<16x16x12xf32>
    %8 = vector.shape_cast %7 : vector<16x16x12xf32> to vector<256x12xf32>
    %c1_9 = arith.constant 1 : index
    %c0_10 = arith.constant 0 : index
    %c0_11 = arith.constant 0 : index
    %9 = vector.load %arg2[%c1_9, %c0_10, %c0_11] : memref<3x12x8xf32, #tpu.memory_space<vmem>>, vector<1x12x8xf32>
    %10 = vector.shape_cast %9 : vector<1x12x8xf32> to vector<12x8xf32>
    %cst_12 = arith.constant dense<0.000000e+00> : vector<256x8xf32>
    %11 = tpu.matmul %8, %10, %cst_12 {dimension_numbers = #tpu.dot_dimension_numbers<[1], [0], [0], [1], [0, 0, 1, 1], [], []>} : vector<256x12xf32>, vector<12x8xf32>, vector<256x8xf32> -> vector<256x8xf32>
    %12 = arith.addf %5, %11 : vector<256x8xf32>
    %c0_13 = arith.constant 0 : index
    %c2 = arith.constant 2 : index
    %c0_14 = arith.constant 0 : index
    %c0_15 = arith.constant 0 : index
    %13 = vector.load %arg1[%c0_13, %c2, %c0_14, %c0_15] : memref<1x18x16x12xf32, #tpu.memory_space<vmem>>, vector<1x16x16x12xf32>
    %14 = vector.shape_cast %13 : vector<1x16x16x12xf32> to vector<16x16x12xf32>
    %15 = vector.shape_cast %14 : vector<16x16x12xf32> to vector<256x12xf32>
    %c2_16 = arith.constant 2 : index
    %c0_17 = arith.constant 0 : index
    %c0_18 = arith.constant 0 : index
    %16 = vector.load %arg2[%c2_16, %c0_17, %c0_18] : memref<3x12x8xf32, #tpu.memory_space<vmem>>, vector<1x12x8xf32>
    %17 = vector.shape_cast %16 : vector<1x12x8xf32> to vector<12x8xf32>
    %cst_19 = arith.constant dense<0.000000e+00> : vector<256x8xf32>
    %18 = tpu.matmul %15, %17, %cst_19 {dimension_numbers = #tpu.dot_dimension_numbers<[1], [0], [0], [1], [0, 0, 1, 1], [], []>} : vector<256x12xf32>, vector<12x8xf32>, vector<256x8xf32> -> vector<256x8xf32>
    %19 = arith.addf %12, %18 : vector<256x8xf32>
    %cst_20 = arith.constant dense<0.000000e+00> : vector<256xf32>
    %20 = vector.multi_reduction <add>, %19, %cst_20 [1] : vector<256x8xf32> to vector<256xf32>
    %21 = vector.shape_cast %20 : vector<256xf32> to vector<256x1xf32>
    %cst_21 = arith.constant dense<0.000000e+00> : vector<1xf32>
    %22 = vector.multi_reduction <add>, %21, %cst_21 [0] : vector<256x1xf32> to vector<1xf32>
    %23 = vector.shape_cast %22 : vector<1xf32> to vector<1x1xf32>
    %cst_22 = arith.constant 4.8828125E-4 : f32
    %24 = vector.broadcast %cst_22 : f32 to vector<1x1xf32>
    %25 = arith.mulf %23, %24 : vector<1x1xf32>
    %26 = arith.mulf %19, %19 : vector<256x8xf32>
    %cst_23 = arith.constant dense<0.000000e+00> : vector<256xf32>
    %27 = vector.multi_reduction <add>, %26, %cst_23 [1] : vector<256x8xf32> to vector<256xf32>
    %28 = vector.shape_cast %27 : vector<256xf32> to vector<256x1xf32>
    %cst_24 = arith.constant dense<0.000000e+00> : vector<1xf32>
    %29 = vector.multi_reduction <add>, %28, %cst_24 [0] : vector<256x1xf32> to vector<1xf32>
    %30 = vector.shape_cast %29 : vector<1xf32> to vector<1x1xf32>
    %cst_25 = arith.constant 4.8828125E-4 : f32
    %31 = vector.broadcast %cst_25 : f32 to vector<1x1xf32>
    %32 = arith.mulf %30, %31 : vector<1x1xf32>
    %33 = arith.mulf %25, %25 : vector<1x1xf32>
    %34 = arith.subf %32, %33 : vector<1x1xf32>
    %cst_26 = arith.constant 9.99999974E-6 : f32
    %35 = vector.broadcast %cst_26 : f32 to vector<1x1xf32>
    %36 = arith.addf %34, %35 : vector<1x1xf32>
    %37 = math.rsqrt %36 : vector<1x1xf32>
    %c0_27 = arith.constant 0 : index
    %c0_28 = arith.constant 0 : index
    %38 = vector.load %arg3[%c0_27, %c0_28] : memref<1x8xf32, #tpu.memory_space<vmem>>, vector<1x8xf32>
    %39 = vector.broadcast %37 : vector<1x1xf32> to vector<1x8xf32>
    %40 = arith.mulf %38, %39 : vector<1x8xf32>
    %c0_29 = arith.constant 0 : index
    %c0_30 = arith.constant 0 : index
    %41 = vector.load %arg4[%c0_29, %c0_30] : memref<1x8xf32, #tpu.memory_space<vmem>>, vector<1x8xf32>
    %42 = vector.broadcast %25 : vector<1x1xf32> to vector<1x8xf32>
    %43 = arith.mulf %42, %40 : vector<1x8xf32>
    %44 = arith.subf %41, %43 : vector<1x8xf32>
    %45 = vector.broadcast %40 : vector<1x8xf32> to vector<256x8xf32>
    %46 = arith.mulf %19, %45 : vector<256x8xf32>
    %47 = vector.broadcast %44 : vector<1x8xf32> to vector<256x8xf32>
    %48 = arith.addf %46, %47 : vector<256x8xf32>
    %49 = vector.shape_cast %48 : vector<256x8xf32> to vector<1x256x8xf32>
    %c0_31 = arith.constant 0 : index
    %c0_32 = arith.constant 0 : index
    %c0_33 = arith.constant 0 : index
    %50 = vector.load %arg5[%c0_31, %c0_32, %c0_33] : memref<1x256x8xf32, #tpu.memory_space<vmem>>, vector<1x256x8xf32>
    tpu.vector_store %arg5[%c0_31, %c0_32, %c0_33], %49 {strides = array<i32>} : memref<1x256x8xf32, #tpu.memory_space<vmem>>, vector<1x256x8xf32>,
    return
  }
  func.func @transform_0(%arg0: i32) -> (i32, i32, i32, i32) {
    %c0_i32 = arith.constant 0 : i32
    %c0_i32_0 = arith.constant 0 : i32
    %c0_i32_1 = arith.constant 0 : i32
    %c0_i32_2 = arith.constant 0 : i32
    return %arg0, %c0_i32, %c0_i32_0, %c0_i32_1 : i32, i32, i32, i32
  }
  func.func @transform_1(%arg0: i32) -> (i32, i32, i32) {
    %c0_i32 = arith.constant 0 : i32
    %c0_i32_0 = arith.constant 0 : i32
    %c0_i32_1 = arith.constant 0 : i32
    %c0_i32_2 = arith.constant 0 : i32
    return %c0_i32, %c0_i32_0, %c0_i32_1 : i32, i32, i32
  }
  func.func @transform_2(%arg0: i32) -> (i32, i32) {
    %c0_i32 = arith.constant 0 : i32
    %c0_i32_0 = arith.constant 0 : i32
    %c0_i32_1 = arith.constant 0 : i32
    return %c0_i32, %c0_i32_0 : i32, i32
  }
  func.func @transform_3(%arg0: i32) -> (i32, i32) {
    %c0_i32 = arith.constant 0 : i32
    %c0_i32_0 = arith.constant 0 : i32
    %c0_i32_1 = arith.constant 0 : i32
    return %c0_i32, %c0_i32_0 : i32, i32
  }
  func.func @transform_4(%arg0: i32) -> (i32, i32, i32) {
    %c0_i32 = arith.constant 0 : i32
    %c0_i32_0 = arith.constant 0 : i32
    %c0_i32_1 = arith.constant 0 : i32
    return %arg0, %c0_i32, %c0_i32_0 : i32, i32, i32
  }
}

</mosaic_0001>

<bundles_post_ra>
// kernel: _lambda_.1
= control target key start
LH: loop header
LB: loop body
LE: loop exit
PB: predicated region body
PF: predicated region fallthrough
CT: control target
= control target key end

     0   :  { %s2349_s15 = smov 0   ;;  %s2876_s0 = inlined_call_operand.vmem [shape: f32[2,18,16,12], index: 0, kind: input, shape index: {}]   ;;  %s2877_s1 = inlined_call_operand.vmem [shape: f32[3,12,8], index: 1, kind: input, shape index: {}]   ;;  %s2878_s2 = inlined_call_operand.vmem [shape: f32[1,8], index: 2, kind: input, shape index: {}]   ;;  %s2879_s3 = inlined_call_operand.vmem [shape: f32[1,8], index: 3, kind: input, shape index: {}]   ;;  %s2880_s4 = inlined_call_operand.vmem [shape: f32[2,256,8], index: 4, kind: output, shape index: {}]  }
   0x1 LB: > { %s1783_s16 = sadd.s32 4294967295, %s2321_s15   ;;  %p1787_p0 = scmp.ge.s32.totalorder %s2321_s15, 1  ;;  %s2321_s15 = sphi %s2349_s15, %s14_s15  }
   0x2   : > { %p162_p1 = scmp.lt.s32.totalorder %s2321_s15, 3 }
   0x4   : > { %p163_p2 = pnand %p1787_p0, %p162_p1 }
   0x6   : > { %166 = sbr.rel (%p163_p2) target bundleno = 601 (0x259), region = 36 }
   0xd   : > { %v230_v0 = vld [vmem:[%s2877_s1] sm:$0xff]  ;;  %v231_v1 = vld [vmem:[%s2877_s1 + $0x8] sm:$0xf]  ;;  %vm365_vm0 = vcmask 1043456   ;;  %v1823_v2 = vld [vmem:[%s2877_s1 + $0x10] sm:$0xff]  ;;  %vm2323_vm1 = vmmov 1  }
   0xe   : > { %vm2366_vm2 = vmpackc.low %vm365_vm0, %vm2323_vm1  ;;  %v2225_v4 = vpack.c.bf16 %v231_v1, %v230_v0  ;;  %v1824_v5 = vld [vmem:[%s2877_s1 + $0x18] sm:$0xf]  ;;  %p188_p3 = scmp.lt.s32.totalorder %s1783_s16, 1  ;;  %v1923_v6 = vld [vmem:[%s2877_s1 + $0x20] sm:$0xff]  ;;  %vm268_vm3 = vcmask 97280   ;;  %vm1310_vm4 = vcmask 64512  }
   0xf   : > { %v2219_v7 = vpack.c.bf16 %v1824_v5, %v1823_v2  ;;  %v1924_v8 = vld [vmem:[%s2877_s1 + $0x28] sm:$0xf] }
  0x10   : > { %2227 = vmatprep.subr.msk.bf16.mxu0 %vm2366_vm2, %v2225_v4  ;;  %s2905_s16 = smov (!%p188_p3, %s1783_s16), 1  ;;  %v2231_v9 = vpack.c.bf16 %v1924_v8, %v1923_v6 }
  0x11   : > { %2221 = vmatprep.subr.msk.bf16.mxu1 %vm2366_vm2, %v2219_v7  ;;  %2230 = vmatpush3.bf16.msk.msra.mxu0 %vm2366_vm2, %v2225_v4  ;;  %s2303_s29 = smul.u32 288, %s2905_s16  ;;  %s1960_s11 = sshll.u32 %s2905_s16, 8 }
  0x12   : > { %2224 = vmatpush3.bf16.msk.msra.mxu1 %vm2366_vm2, %v2219_v7  ;;  %2233 = vmatprep.subr.msk.bf16.mxu0 %vm2366_vm2, %v2231_v9  ;;  %s2803_s14 = scalar_lea.vmem %s2880_s4, %s1960_s11 }
  0x13   : > { %2237 = vmatprep.subr.msk.bf16.mxu1 %vm2366_vm2, %v2225_v4  ;;  %s2397_s6 = scalar_lea.vmem %s2876_s0, %s2303_s29 }
  0x14   : > { %v1791_v10 = vld [vmem:[%s2397_s6 + $0x10] sm:$0xff]  ;;  %v198_v11 = vld [vmem:[%s2397_s6] sm:$0xff]  ;;  %v1792_v12 = vld [vmem:[%s2397_s6 + $0x18] sm:$0xff] }
  0x15   : > { %2067 = vmatprep.mubr.msk.f32.mxu1 %vm268_vm3, %v1791_v10  ;;  %2119 = vmatprep.mubr.msk.f32.mxu0 %vm268_vm3, %v198_v11  ;;  %v199_v13 = vld [vmem:[%s2397_s6 + $0x8] sm:$0xff]  ;;  %v1793_v14 = vld [vmem:[%s2397_s6 + $0x20] sm:$0xff]  ;;  %v1795_v16 = vld [vmem:[%s2397_s6 + $0x30] sm:$0xff] }
  0x16   : > { %2068 = vmatmul.mubr.msk.f32.vlgmr.msra.gmra.mrb[0].mxu1 %vm268_vm3, %v1792_v12  ;;  %2120 = vmatmul.mubr.msk.f32.vlgmr.msra.gmra.mrb[0].mxu0 %vm268_vm3, %v199_v13  ;;  %v1794_v15 = vld [vmem:[%s2397_s6 + $0x28] sm:$0xff]  ;;  %v1796_v17 = vld [vmem:[%s2397_s6 + $0x38] sm:$0xff]  ;;  %v1797_v18 = vld [vmem:[%s2397_s6 + $0x40] sm:$0xff] }
  0x17   : > { %2236 = vmatpush3.bf16.msk.msra.mxu0 %vm2366_vm2, %v2231_v9  ;;  %2070 = vmatprep.mubr.msk.f32.mxu1 %vm268_vm3, %v1793_v14  ;;  %v1798_v19 = vld [vmem:[%s2397_s6 + $0x48] sm:$0xff]  ;;  %v1799_v20 = vld [vmem:[%s2397_s6 + $0x50] sm:$0xff]  ;;  %v1800_v21 = vld [vmem:[%s2397_s6 + $0x58] sm:$0xff] }
  0x18   : > { %2122 = vmatprep.mubr.msk.f32.mxu0 %vm268_vm3, %v1791_v10  ;;  %2238 = vmatpush3.bf16.msk.msra.mxu1 %vm2366_vm2, %v2225_v4  ;;  %v1801_v22 = vld [vmem:[%s2397_s6 + $0x60] sm:$0xff]  ;;  %v1802_v23 = vld [vmem:[%s2397_s6 + $0x68] sm:$0xff]  ;;  %v1803_v24 = vld [vmem:[%s2397_s6 + $0x70] sm:$0xff] }
  0x19   : > { %v1804_v25 = vld [vmem:[%s2397_s6 + $0x78] sm:$0xff]  ;;  %v1805_v26 = vld [vmem:[%s2397_s6 + $0x80] sm:$0xff]  ;;  %v1806_v27 = vld [vmem:[%s2397_s6 + $0x88] sm:$0xff] }
  0x1a   : > { %2071 = vmatmul.mubr.msk.f32.gmra.mrb[2].mxu1 %vm268_vm3, %v1794_v15  ;;  %2123 = vmatmul.mubr.msk.f32.gmra.mrb[2].mxu0 %vm268_vm3, %v1792_v12  ;;  %v1807_v28 = vld [vmem:[%s2397_s6 + $0x90] sm:$0xff]  ;;  %v1808_v29 = vld [vmem:[%s2397_s6 + $0x98] sm:$0xff]  ;;  %v1809_v30 = vld [vmem:[%s2397_s6 + $0xa0] sm:$0xff] }
  0x1b   : > { %2073 = vmatprep.mubr.msk.f32.mxu1 %vm268_vm3, %v1795_v16  ;;  %2125 = vmatprep.mubr.msk.f32.mxu0 %vm268_vm3, %v1793_v14  ;;  %v1810_v31 = vld [vmem:[%s2397_s6 + $0xa8] sm:$0xff]  ;;  %v1811_v32 = vld [vmem:[%s2397_s6 + $0xb0] sm:$0xff]  ;;  %v1812_v33 = vld [vmem:[%s2397_s6 + $0xb8] sm:$0xff] }
  0x1c   : > { %v1813_v34 = vld [vmem:[%s2397_s6 + $0xc0] sm:$0xff]  ;;  %v1814_v35 = vld [vmem:[%s2397_s6 + $0xc8] sm:$0xff]  ;;  %v1815_v36 = vld [vmem:[%s2397_s6 + $0xd0] sm:$0xff] }
  0x1d   : > { %v1816_v37 = vld [vmem:[%s2397_s6 + $0xd8] sm:$0xff]  ;;  %v1817_v38 = vld [vmem:[%s2397_s6 + $0xe0] sm:$0xff]  ;;  %v1818_v39 = vld [vmem:[%s2397_s6 + $0xe8] sm:$0xff] }
  0x1e   : > { %2074 = vmatmul.mubr.msk.f32.gmra.mrb[4].mxu1 %vm268_vm3, %v1796_v17  ;;  %2126 = vmatmul.mubr.msk.f32.gmra.mrb[4].mxu0 %vm268_vm3, %v1794_v15  ;;  %v1819_v40 = vld [vmem:[%s2397_s6 + $0xf0] sm:$0xff]  ;;  %v1820_v41 = vld [vmem:[%s2397_s6 + $0xf8] sm:$0xff]  ;;  %v1821_v42 = vld [vmem:[%s2397_s6 + $0x100] sm:$0xff] }
  0x1f   : > { %2076 = vmatprep.mubr.msk.f32.mxu1 %vm268_vm3, %v1797_v18  ;;  %2128 = vmatprep.mubr.msk.f32.mxu0 %vm268_vm3, %v1795_v16  ;;  %v1822_v43 = vld [vmem:[%s2397_s6 + $0x108] sm:$0xff]  ;;  %v1921_v44 = vld [vmem:[%s2397_s6 + $0x110] sm:$0xff]  ;;  %v1922_v45 = vld [vmem:[%s2397_s6 + $0x118] sm:$0xff] }
  0x22   : > { %2077 = vmatmul.mubr.msk.f32.gmra.mrb[6].mxu1 %vm268_vm3, %v1798_v19  ;;  %2129 = vmatmul.mubr.msk.f32.gmra.mrb[6].mxu0 %vm268_vm3, %v1796_v17 }
  0x23   : > { %2079 = vmatprep.mubr.msk.f32.mxu1 %vm268_vm3, %v1799_v20  ;;  %2131 = vmatprep.mubr.msk.f32.mxu0 %vm268_vm3, %v1797_v18 }
  0x26   : > { %2080 = vmatmul.mubr.msk.f32.gmra.mrb[8].mxu1 %vm268_vm3, %v1800_v21  ;;  %2132 = vmatmul.mubr.msk.f32.gmra.mrb[8].mxu0 %vm268_vm3, %v1798_v19 }
  0x27   : > { %2082 = vmatprep.mubr.msk.f32.mxu1 %vm268_vm3, %v1801_v22  ;;  %2134 = vmatprep.mubr.msk.f32.mxu0 %vm268_vm3, %v1799_v20 }
  0x2a   : > { %2083 = vmatmul.mubr.msk.f32.gmra.mrb[10].mxu1 %vm268_vm3, %v1802_v23  ;;  %2135 = vmatmul.mubr.msk.f32.gmra.mrb[10].mxu0 %vm268_vm3, %v1800_v21 }
  0x2b   : > { %2085 = vmatprep.mubr.msk.f32.mxu1 %vm268_vm3, %v1803_v24  ;;  %2137 = vmatprep.mubr.msk.f32.mxu0 %vm268_vm3, %v1801_v22 }
  0x2e   : > { %2086 = vmatmul.mubr.msk.f32.gmra.mrb[12].mxu1 %vm268_vm3, %v1804_v25  ;;  %2138 = vmatmul.mubr.msk.f32.gmra.mrb[12].mxu0 %vm268_vm3, %v1802_v23 }
  0x2f   : > { %2088 = vmatprep.mubr.msk.f32.mxu1 %vm268_vm3, %v1805_v26  ;;  %2140 = vmatprep.mubr.msk.f32.mxu0 %vm268_vm3, %v1803_v24 }
  0x32   : > { %2089 = vmatmul.mubr.msk.f32.gmra.mrb[14].mxu1 %vm268_vm3, %v1806_v27  ;;  %2141 = vmatmul.mubr.msk.f32.gmra.mrb[14].mxu0 %vm268_vm3, %v1804_v25 }
  0x33   : > { %2091 = vmatprep.mubr.msk.f32.mxu1 %vm268_vm3, %v1807_v28  ;;  %2171 = vmatprep.mubr.msk.f32.mxu0 %vm268_vm3, %v1793_v14 }
  0x36   : > { %2092 = vmatmul.mubr.msk.f32.gmra.mrb[16].mxu1 %vm268_vm3, %v1808_v29  ;;  %2172 = vmatmul.mubr.msk.f32.vlgmr.msra.gmra.mrb[0].mxu0 %vm268_vm3, %v1794_v15 }
  0x37   : > { %2094 = vmatprep.mubr.msk.f32.mxu1 %vm268_vm3, %v1809_v30  ;;  %2174 = vmatprep.mubr.msk.f32.mxu0 %vm268_vm3, %v1795_v16 }
  0x3a   : > { %2095 = vmatmul.mubr.msk.f32.gmra.mrb[18].mxu1 %vm268_vm3, %v1810_v31  ;;  %2175 = vmatmul.mubr.msk.f32.gmra.mrb[2].mxu0 %vm268_vm3, %v1796_v17 }
  0x3b   : > { %2097 = vmatprep.mubr.msk.f32.mxu1 %vm268_vm3, %v1811_v32  ;;  %2177 = vmatprep.mubr.msk.f32.mxu0 %vm268_vm3, %v1797_v18 }
  0x3e   : > { %2098 = vmatmul.mubr.msk.f32.gmra.mrb[20].mxu1 %vm268_vm3, %v1812_v33  ;;  %2178 = vmatmul.mubr.msk.f32.gmra.mrb[4].mxu0 %vm268_vm3, %v1798_v19 }
  0x3f   : > { %2100 = vmatprep.mubr.msk.f32.mxu1 %vm268_vm3, %v1813_v34  ;;  %2180 = vmatprep.mubr.msk.f32.mxu0 %vm268_vm3, %v1799_v20 }
  0x42   : > { %2101 = vmatmul.mubr.msk.f32.gmra.mrb[22].mxu1 %vm268_vm3, %v1814_v35  ;;  %2181 = vmatmul.mubr.msk.f32.gmra.mrb[6].mxu0 %vm268_vm3, %v1800_v21 }
  0x43   : > { %2103 = vmatprep.mubr.msk.f32.mxu1 %vm268_vm3, %v1815_v36  ;;  %2183 = vmatprep.mubr.msk.f32.mxu0 %vm268_vm3, %v1801_v22 }
  0x46   : > { %2104 = vmatmul.mubr.msk.f32.gmra.mrb[24].mxu1 %vm268_vm3, %v1816_v37  ;;  %2184 = vmatmul.mubr.msk.f32.gmra.mrb[8].mxu0 %vm268_vm3, %v1802_v23 }
  0x47   : > { %2106 = vmatprep.mubr.msk.f32.mxu1 %vm268_vm3, %v1817_v38  ;;  %2186 = vmatprep.mubr.msk.f32.mxu0 %vm268_vm3, %v1803_v24 }
  0x4a   : > { %2107 = vmatmul.mubr.msk.f32.gmra.mrb[26].mxu1 %vm268_vm3, %v1818_v39  ;;  %2187 = vmatmul.mubr.msk.f32.gmra.mrb[10].mxu0 %vm268_vm3, %v1804_v25 }
  0x4b   : > { %2109 = vmatprep.mubr.msk.f32.mxu1 %vm268_vm3, %v1819_v40  ;;  %2189 = vmatprep.mubr.msk.f32.mxu0 %vm268_vm3, %v1805_v26 }
  0x4e   : > { %2110 = vmatmul.mubr.msk.f32.gmra.mrb[28].mxu1 %vm268_vm3, %v1820_v41  ;;  %2190 = vmatmul.mubr.msk.f32.gmra.mrb[12].mxu0 %vm268_vm3, %v1806_v27 }
  0x4f   : > { %2112 = vmatprep.mubr.msk.f32.mxu1 %vm268_vm3, %v1821_v42  ;;  %2192 = vmatprep.mubr.msk.f32.mxu0 %vm268_vm3, %v1807_v28 }
  0x52   : > { %2113 = vmatmul.mubr.msk.f32.gmra.mrb[30].mxu1 %vm268_vm3, %v1822_v43  ;;  %2193 = vmatmul.mubr.msk.f32.gmra.mrb[14].mxu0 %vm268_vm3, %v1808_v29 }
  0x53   : > { %2143 = vmatprep.mubr.msk.f32.mxu1 %vm268_vm3, %v1805_v26  ;;  %2195 = vmatprep.mubr.msk.f32.mxu0 %vm268_vm3, %v1809_v30 }
  0x56   : > { %2144 = vmatmul.mubr.msk.f32.vlgmr.msra.gmra.mrb[16].mxu1 %vm268_vm3, %v1806_v27  ;;  %2196 = vmatmul.mubr.msk.f32.gmra.mrb[16].mxu0 %vm268_vm3, %v1810_v31 }
  0x57   : > { %2146 = vmatprep.mubr.msk.f32.mxu1 %vm268_vm3, %v1807_v28  ;;  %2198 = vmatprep.mubr.msk.f32.mxu0 %vm268_vm3, %v1811_v32 }
  0x5a   : > { %2147 = vmatmul.mubr.msk.f32.gmra.mrb[18].mxu1 %vm268_vm3, %v1808_v29  ;;  %2199 = vmatmul.mubr.msk.f32.gmra.mrb[18].mxu0 %vm268_vm3, %v1812_v33 }
  0x5b   : > { %2149 = vmatprep.mubr.msk.f32.mxu1 %vm268_vm3, %v1809_v30  ;;  %2201 = vmatprep.mubr.msk.f32.mxu0 %vm268_vm3, %v1813_v34 }
  0x5e   : > { %2150 = vmatmul.mubr.msk.f32.gmra.mrb[20].mxu1 %vm268_vm3, %v1810_v31  ;;  %2202 = vmatmul.mubr.msk.f32.gmra.mrb[20].mxu0 %vm268_vm3, %v1814_v35 }
  0x5f   : > { %2152 = vmatprep.mubr.msk.f32.mxu1 %vm268_vm3, %v1811_v32  ;;  %2204 = vmatprep.mubr.msk.f32.mxu0 %vm268_vm3, %v1815_v36 }
  0x62   : > { %2153 = vmatmul.mubr.msk.f32.gmra.mrb[22].mxu1 %vm268_vm3, %v1812_v33  ;;  %2205 = vmatmul.mubr.msk.f32.gmra.mrb[22].mxu0 %vm268_vm3, %v1816_v37 }
  0x63   : > { %2155 = vmatprep.mubr.msk.f32.mxu1 %vm268_vm3, %v1813_v34  ;;  %2207 = vmatprep.mubr.msk.f32.mxu0 %vm268_vm3, %v1817_v38 }
  0x66   : > { %2156 = vmatmul.mubr.msk.f32.gmra.mrb[24].mxu1 %vm268_vm3, %v1814_v35  ;;  %2208 = vmatmul.mubr.msk.f32.gmra.mrb[24].mxu0 %vm268_vm3, %v1818_v39 }
  0x67   : > { %2158 = vmatprep.mubr.msk.f32.mxu1 %vm268_vm3, %v1815_v36  ;;  %2210 = vmatprep.mubr.msk.f32.mxu0 %vm268_vm3, %v1819_v40 }
  0x6a   : > { %2159 = vmatmul.mubr.msk.f32.gmra.mrb[26].mxu1 %vm268_vm3, %v1816_v37  ;;  %2211 = vmatmul.mubr.msk.f32.gmra.mrb[26].mxu0 %vm268_vm3, %v1820_v41 }
  0x6b   : > { %2161 = vmatprep.mubr.msk.f32.mxu1 %vm268_vm3, %v1817_v38  ;;  %2213 = vmatprep.mubr.msk.f32.mxu0 %vm268_vm3, %v1821_v42 }
  0x6e   : > { %2162 = vmatmul.mubr.msk.f32.gmra.mrb[28].mxu1 %vm268_vm3, %v1818_v39  ;;  %2214 = vmatmul.mubr.msk.f32.gmra.mrb[28].mxu0 %vm268_vm3, %v1822_v43 }
  0x6f   : > { %2164 = vmatprep.mubr.msk.f32.mxu1 %vm268_vm3, %v1819_v40  ;;  %2216 = vmatprep.mubr.msk.f32.mxu0 %vm268_vm3, %v1921_v44 }
  0x72   : > { %2165 = vmatmul.mubr.msk.f32.gmra.mrb[30].mxu1 %vm268_vm3, %v1820_v41  ;;  %2217 = vmatmul.mubr.msk.f32.gmra.mrb[30].mxu0 %vm268_vm3, %v1922_v45 }
  0xe9   : > { %v2069_v46 = vpop.f32.mrb[0].mxu1 }
  0xea   : > { %v435_v47 = vpop.f32.mrb[1].mxu1 }
  0xed   : > { %v2072_v48 = vpop.f32.mrb[2].mxu1 }
  0xee   : > { %v445_v49 = vpop.f32.mrb[3].mxu1 }
  0xf1   : > { %v2075_v50 = vpop.f32.mrb[4].mxu1 }
  0xf2   : > { %v455_v51 = vpop.f32.mrb[5].mxu1 }
  0xf5   : > { %v2078_v52 = vpop.f32.mrb[6].mxu1 }
  0xf6   : > { %v465_v53 = vpop.f32.mrb[7].mxu1 }
  0xf9   : > { %v2081_v54 = vpop.f32.mrb[8].mxu1 }
  0xfa   : > { %v475_v55 = vpop.f32.mrb[9].mxu1 }
  0xfd   : > { %v2084_v56 = vpop.f32.mrb[10].mxu1 }
  0xfe   : > { %v485_v57 = vpop.f32.mrb[11].mxu1 }
 0x101   : > { %v2087_v58 = vpop.f32.mrb[12].mxu1 }
 0x102   : > { %v495_v59 = vpop.f32.mrb[13].mxu1 }
 0x105   : > { %v2535_v60 = vpop.f32.mrb[14].mxu1 }
 0x106   : > { %v2537_v61 = vpop.f32.mrb[15].mxu1 }
 0x109   : > { %v2173_v62 = vpop.f32.mrb[0].mxu0 }
 0x10a   : > { %v2539_v63 = vadd.f32 %v2173_v62, %v2069_v46  ;;  %v1119_v0 = vpop.f32.mrb[1].mxu0 }
 0x10b   : > { %v2541_v1 = vadd.f32 %v1119_v0, %v435_v47 }
 0x10c   : > { %v1314_v2 = vsel %vm1310_vm4, %v2539_v63, 0.0  ;;  %v1446_v10 = vmul.f32 %v2539_v63, %v2539_v63 }
 0x10d   : > { %1315 = vadd.xlane.f32.xlu0 %v1314_v2  ;;  %v2176_v3 = vpop.f32.mrb[2].mxu0  ;;  %v1445_v4 = vmul.f32 %v2541_v1, %v2541_v1  ;;  %v1311_v9 = vsel %vm1310_vm4, %v2541_v1, 0.0 }
 0x10e   : > { %v2547_v5 = vadd.f32 %v2176_v3, %v2072_v48  ;;  %v1129_v6 = vpop.f32.mrb[3].mxu0  ;;  %v1480_v16 = vsel %vm1310_vm4, %v1446_v10, 0.0 }
 0x10f   : > { %v2549_v7 = vadd.f32 %v1129_v6, %v445_v49  ;;  %v1477_v8 = vsel %vm1310_vm4, %v1445_v4, 0.0 }
 0x110   : > { %1478 = vadd.xlane.f32.xlu1 %v1477_v8  ;;  %v1320_v15 = vsel %vm1310_vm4, %v2547_v5, 0.0  ;;  %v1448_v17 = vmul.f32 %v2547_v5, %v2547_v5 }
 0x111   : > { %1312 = vadd.xlane.f32.xlu0 %v1311_v9  ;;  %v2179_v11 = vpop.f32.mrb[4].mxu0  ;;  %v1317_v22 = vsel %vm1310_vm4, %v2549_v7, 0.0  ;;  %v1447_v24 = vmul.f32 %v2549_v7, %v2549_v7 }
 0x112   : > { %v2556_v12 = vadd.f32 %v2179_v11, %v2075_v50  ;;  %v1139_v13 = vpop.f32.mrb[5].mxu0  ;;  %v1486_v23 = vsel %vm1310_vm4, %v1448_v17, 0.0 }
 0x113   : > { %v2558_v14 = vadd.f32 %v1139_v13, %v455_v51  ;;  %v1483_v30 = vsel %vm1310_vm4, %v1447_v24, 0.0 }
 0x114   : > { %1321 = vadd.xlane.f32.xlu1 %v1320_v15  ;;  %v1326_v29 = vsel %vm1310_vm4, %v2556_v12, 0.0  ;;  %v1450_v31 = vmul.f32 %v2556_v12, %v2556_v12 }
 0x115   : > { %1481 = vadd.xlane.f32.xlu0 %v1480_v16  ;;  %v2182_v18 = vpop.f32.mrb[6].mxu0  ;;  %v1323_v36 = vsel %vm1310_vm4, %v2558_v14, 0.0  ;;  %v1449_v38 = vmul.f32 %v2558_v14, %v2558_v14 }
 0x116   : > { %v2565_v19 = vadd.f32 %v2182_v18, %v2078_v52  ;;  %v1149_v20 = vpop.f32.mrb[7].mxu0  ;;  %v1492_v37 = vsel %vm1310_vm4, %v1450_v31, 0.0 }
 0x117   : > { %v2567_v21 = vadd.f32 %v1149_v20, %v465_v53  ;;  %v1489_v44 = vsel %vm1310_vm4, %v1449_v38, 0.0 }
 0x118   : > { %1318 = vadd.xlane.f32.xlu1 %v1317_v22  ;;  %v1332_v43 = vsel %vm1310_vm4, %v2565_v19, 0.0  ;;  %v1452_v45 = vmul.f32 %v2565_v19, %v2565_v19 }
 0x119   : > { %1487 = vadd.xlane.f32.xlu0 %v1486_v23  ;;  %v2185_v25 = vpop.f32.mrb[8].mxu0  ;;  %v1329_v50 = vsel %vm1310_vm4, %v2567_v21, 0.0  ;;  %v1451_v52 = vmul.f32 %v2567_v21, %v2567_v21 }
 0x11a   : > { %v2574_v26 = vadd.f32 %v2185_v25, %v2081_v54  ;;  %v1159_v27 = vpop.f32.mrb[9].mxu0  ;;  %v1498_v51 = vsel %vm1310_vm4, %v1452_v45, 0.0 }
 0x11b   : > { %v2576_v28 = vadd.f32 %v1159_v27, %v475_v55 }
 0x11c   : > { %1327 = vadd.xlane.f32.xlu1 %v1326_v29 }
 0x11d   : > { %1484 = vadd.xlane.f32.xlu0 %v1483_v30  ;;  %v2188_v32 = vpop.f32.mrb[10].mxu0  ;;  %v1335_v8 = vsel %vm1310_vm4, %v2576_v28, 0.0  ;;  %v1453_v10 = vmul.f32 %v2576_v28, %v2576_v28 }
 0x11e   : > { %v2583_v33 = vadd.f32 %v2188_v32, %v2084_v56  ;;  %v1169_v34 = vpop.f32.mrb[11].mxu0 }
 0x11f   : > { %v2585_v35 = vadd.f32 %v1169_v34, %v485_v57  ;;  %v1501_v22 = vsel %vm1310_vm4, %v1453_v10, 0.0 }
 0x120   : > { %1324 = vadd.xlane.f32.xlu1 %v1323_v36  ;;  %v1344_v20 = vsel %vm1310_vm4, %v2583_v33, 0.0  ;;  %v1456_v23 = vmul.f32 %v2583_v33, %v2583_v33 }
 0x121   : > { %1493 = vadd.xlane.f32.xlu0 %v1492_v37  ;;  %v2191_v39 = vpop.f32.mrb[12].mxu0  ;;  %v1341_v32 = vsel %vm1310_vm4, %v2585_v35, 0.0  ;;  %v1455_v36 = vmul.f32 %v2585_v35, %v2585_v35 }
 0x122   : > { %v2592_v40 = vadd.f32 %v2191_v39, %v2087_v58  ;;  %v1179_v41 = vpop.f32.mrb[13].mxu0  ;;  %v1510_v34 = vsel %vm1310_vm4, %v1456_v23, 0.0 }
 0x123   : > { %v2594_v42 = vadd.f32 %v1179_v41, %v495_v59  ;;  %v1338_v59 = vsel %vm1310_vm4, %v2574_v26, 0.0 }
 0x124   : > { %1333 = vadd.xlane.f32.xlu1 %v1332_v43  ;;  %v1350_v45 = vsel %vm1310_vm4, %v2592_v40, 0.0 }
 0x125   : > { %1490 = vadd.xlane.f32.xlu0 %v1489_v44  ;;  %v2194_v46 = vpop.f32.mrb[14].mxu0 }
 0x126   : > { %v2602_v47 = vadd.f32 %v2194_v46, %v2535_v60  ;;  %v1189_v48 = vpop.f32.mrb[15].mxu0  ;;  %v1495_v60 = vsel %vm1310_vm4, %v1451_v52, 0.0  ;;  %v1507_v46 = vsel %vm1310_vm4, %v1455_v36, 0.0 }
 0x127   : > { %v2605_v49 = vadd.f32 %v1189_v48, %v2537_v61  ;;  %v1454_v61 = vmul.f32 %v2574_v26, %v2574_v26  ;;  %v1458_v48 = vmul.f32 %v2592_v40, %v2592_v40 }
 0x128   : > { %1330 = vadd.xlane.f32.xlu1 %v1329_v50 }
 0x129   : > { %v2145_v53 = vpop.f32.mrb[16].mxu1  ;;  %1499 = vadd.xlane.f32.xlu0 %v1498_v51  ;;  %v2197_v54 = vpop.f32.mrb[16].mxu0  ;;  %v1504_v9 = vsel %vm1310_vm4, %v1454_v61, 0.0 }
 0x12a   : > { %v2612_v55 = vadd.f32 %v2197_v54, %v2145_v53  ;;  %v839_v56 = vpop.f32.mrb[17].mxu1  ;;  %v1199_v57 = vpop.f32.mrb[17].mxu0 }
 0x12b   : > { %v2614_v58 = vadd.f32 %v1199_v57, %v839_v56  ;;  %v1347_v57 = vsel %vm1310_vm4, %v2594_v42, 0.0 }
 0x12c   : > { %1339 = vadd.xlane.f32.xlu1 %v1338_v59  ;;  %v1516_v59 = vsel %vm1310_vm4, %v1458_v48, 0.0 }
 0x12d   : > { %v2148_v62 = vpop.f32.mrb[18].mxu1  ;;  %1496 = vadd.xlane.f32.xlu0 %v1495_v60  ;;  %v2200_v0 = vpop.f32.mrb[18].mxu0  ;;  %v1457_v60 = vmul.f32 %v2594_v42, %v2594_v42  ;;  %v1359_v36 = vsel %vm1310_vm4, %v2614_v58, 0.0 }
 0x12e   : > { %v2621_v2 = vadd.f32 %v2200_v0, %v2148_v62  ;;  %v849_v3 = vpop.f32.mrb[19].mxu1  ;;  %v1209_v4 = vpop.f32.mrb[19].mxu0 }
 0x12f   : > { %v2623_v6 = vadd.f32 %v1209_v4, %v849_v3  ;;  %v1513_v10 = vsel %vm1310_vm4, %v1457_v60, 0.0 }
 0x130   : > { %1336 = vadd.xlane.f32.xlu1 %v1335_v8 }
 0x131   : > { %v2151_v11 = vpop.f32.mrb[20].mxu1  ;;  %1505 = vadd.xlane.f32.xlu0 %v1504_v9  ;;  %v2203_v13 = vpop.f32.mrb[20].mxu0  ;;  %v1356_v9 = vsel %vm1310_vm4, %v2602_v47, 0.0 }
 0x132   : > { %v2630_v15 = vadd.f32 %v2203_v13, %v2151_v11  ;;  %v859_v16 = vpop.f32.mrb[21].mxu1  ;;  %v1219_v17 = vpop.f32.mrb[21].mxu0  ;;  %v1460_v11 = vmul.f32 %v2602_v47, %v2602_v47 }
 0x133   : > { %v2632_v18 = vadd.f32 %v1219_v17, %v859_v16 }
 0x134   : > { %1345 = vadd.xlane.f32.xlu1 %v1344_v20 }
 0x135   : > { %v2154_v24 = vpop.f32.mrb[22].mxu1  ;;  %1502 = vadd.xlane.f32.xlu0 %v1501_v22  ;;  %v2206_v25 = vpop.f32.mrb[22].mxu0  ;;  %v1465_v60 = vmul.f32 %v2632_v18, %v2632_v18 }
 0x136   : > { %v2639_v27 = vadd.f32 %v2206_v25, %v2154_v24  ;;  %v869_v29 = vpop.f32.mrb[23].mxu1  ;;  %v1229_v30 = vpop.f32.mrb[23].mxu0  ;;  %v1353_v24 = vsel %vm1310_vm4, %v2605_v49, 0.0  ;;  %v1522_v25 = vsel %vm1310_vm4, %v1460_v11, 0.0 }
 0x137   : > { %v2641_v31 = vadd.f32 %v1229_v30, %v869_v29  ;;  %v1459_v29 = vmul.f32 %v2605_v49, %v2605_v49  ;;  %v1362_v30 = vsel %vm1310_vm4, %v2612_v55, 0.0 }
 0x138   : > { %1342 = vadd.xlane.f32.xlu1 %v1341_v32 }
 0x139   : > { %v2157_v37 = vpop.f32.mrb[24].mxu1  ;;  %1511 = vadd.xlane.f32.xlu0 %v1510_v34  ;;  %v2209_v38 = vpop.f32.mrb[24].mxu0  ;;  %v1519_v32 = vsel %vm1310_vm4, %v1459_v29, 0.0  ;;  %v1462_v34 = vmul.f32 %v2612_v55, %v2612_v55 }
 0x13a   : > { %v2648_v39 = vadd.f32 %v2209_v38, %v2157_v37  ;;  %v879_v41 = vpop.f32.mrb[25].mxu1  ;;  %v1239_v43 = vpop.f32.mrb[25].mxu0  ;;  %v1461_v38 = vmul.f32 %v2614_v58, %v2614_v58 }
 0x13b   : > { %v2650_v44 = vadd.f32 %v1239_v43, %v879_v41  ;;  %v1528_v37 = vsel %vm1310_vm4, %v1462_v34, 0.0  ;;  %v1368_v41 = vsel %vm1310_vm4, %v2621_v2, 0.0 }
 0x13c   : > { %2890 = vst [vmem:[#allocation2_spill] sm:$0xff] %v2648_v39  ;;  %1351 = vadd.xlane.f32.xlu1 %v1350_v45  ;;  %v1525_v43 = vsel %vm1310_vm4, %v1461_v38, 0.0  ;;  %v1464_v45 = vmul.f32 %v2621_v2, %v2621_v2  ;;  %v1386_v11 = vsel %vm1310_vm4, %v2648_v39, 0.0 }
 0x13d   : > { %v2160_v50 = vpop.f32.mrb[26].mxu1  ;;  %1508 = vadd.xlane.f32.xlu0 %v1507_v46  ;;  %v2212_v51 = vpop.f32.mrb[26].mxu0  ;;  %v1365_v46 = vsel %vm1310_vm4, %v2623_v6, 0.0 }
 0x13e   : > { %v2657_v52 = vadd.f32 %v2212_v51, %v2160_v50  ;;  %v889_v53 = vpop.f32.mrb[27].mxu1  ;;  %v1249_v54 = vpop.f32.mrb[27].mxu0  ;;  %v1534_v48 = vsel %vm1310_vm4, %v1464_v45, 0.0  ;;  %v1463_v50 = vmul.f32 %v2623_v6, %v2623_v6  ;;  %v1374_v51 = vsel %vm1310_vm4, %v2630_v15, 0.0 }
 0x13f   : > { %v2659_v56 = vadd.f32 %v1249_v54, %v889_v53  ;;  %v1466_v54 = vmul.f32 %v2630_v15, %v2630_v15 }
 0x140   : > { %2891 = vst [vmem:[#allocation3_spill] sm:$0xff] %v2657_v52  ;;  %1348 = vadd.xlane.f32.xlu1 %v1347_v57  ;;  %v1531_v53 = vsel %vm1310_vm4, %v1463_v50, 0.0  ;;  %v1371_v57 = vsel %vm1310_vm4, %v2632_v18, 0.0 }
 0x141   : > { %2892 = vst [vmem:[#allocation4_spill] sm:$0xff] %v2659_v56  ;;  %v2163_v61 = vpop.f32.mrb[28].mxu1  ;;  %1517 = vadd.xlane.f32.xlu0 %v1516_v59  ;;  %v2215_v62 = vpop.f32.mrb[28].mxu0  ;;  %v1540_v59 = vsel %vm1310_vm4, %v1466_v54, 0.0 }
 0x142   : > { %v2666_v0 = vadd.f32 %v2215_v62, %v2163_v61  ;;  %v899_v3 = vpop.f32.mrb[29].mxu1  ;;  %v1259_v4 = vpop.f32.mrb[29].mxu0  ;;  %v1380_v61 = vsel %vm1310_vm4, %v2639_v27, 0.0  ;;  %v1537_v62 = vsel %vm1310_vm4, %v1465_v60, 0.0 }
 0x143   : > { %v2668_v8 = vadd.f32 %v1259_v4, %v899_v3  ;;  %v1468_v3 = vmul.f32 %v2639_v27, %v2639_v27  ;;  %v1377_v4 = vsel %vm1310_vm4, %v2641_v31, 0.0 }
 0x144   : > { %2893 = vst [vmem:[#allocation5_spill] sm:$0xff] %v2666_v0  ;;  %1357 = vadd.xlane.f32.xlu1 %v1356_v9 }
 0x145   : > { %2894 = vst [vmem:[#allocation6_spill] sm:$0xff] %v2668_v8  ;;  %v2166_v13 = vpop.f32.mrb[30].mxu1  ;;  %1514 = vadd.xlane.f32.xlu0 %v1513_v10  ;;  %v2218_v16 = vpop.f32.mrb[30].mxu0  ;;  %v1546_v9 = vsel %vm1310_vm4, %v1468_v3, 0.0  ;;  %v1467_v10 = vmul.f32 %v2641_v31, %v2641_v31 }
 0x146   : > { %v2675_v17 = vadd.f32 %v2218_v16, %v2166_v13  ;;  %v909_v20 = vpop.f32.mrb[31].mxu1  ;;  %v1269_v22 = vpop.f32.mrb[31].mxu0  ;;  %v1470_v16 = vmul.f32 %v2648_v39, %v2648_v39 }
 0x147   : > { %v2677_v23 = vadd.f32 %v1269_v22, %v909_v20  ;;  %v1543_v13 = vsel %vm1310_vm4, %v1467_v10, 0.0  ;;  %v1383_v20 = vsel %vm1310_vm4, %v2650_v44, 0.0 }
 0x148   : > { %2895 = vst [vmem:[#allocation7_spill] sm:$0xff] %v2675_v17  ;;  %1354 = vadd.xlane.f32.xlu1 %v1353_v24  ;;  %v1552_v22 = vsel %vm1310_vm4, %v1470_v16, 0.0  ;;  %v1469_v24 = vmul.f32 %v2650_v44, %v2650_v44  ;;  %v1476_v54 = vmul.f32 %v2675_v17, %v2675_v17 }
 0x149   : > { %2896 = vst [vmem:[#allocation8_spill] sm:$0xff] %v2677_v23  ;;  %1523 = vadd.xlane.f32.xlu0 %v1522_v25  ;;  %v1392_v25 = vsel %vm1310_vm4, %v2657_v52, 0.0 }
 0x14a   : > { %v1549_v29 = vsel %vm1310_vm4, %v1469_v24, 0.0 }
 0x14c   : > { %1363 = vadd.xlane.f32.xlu1 %v1362_v30  ;;  %v1472_v30 = vmul.f32 %v2657_v52, %v2657_v52 }
 0x14d   : > { %1520 = vadd.xlane.f32.xlu0 %v1519_v32  ;;  %v1389_v32 = vsel %vm1310_vm4, %v2659_v56, 0.0 }
 0x14e   : > { %v1558_v34 = vsel %vm1310_vm4, %v1472_v30, 0.0 }
 0x150   : > { %1360 = vadd.xlane.f32.xlu1 %v1359_v36  ;;  %v1471_v36 = vmul.f32 %v2659_v56, %v2659_v56 }
 0x151   : > { %1529 = vadd.xlane.f32.xlu0 %v1528_v37  ;;  %v1398_v37 = vsel %vm1310_vm4, %v2666_v0, 0.0 }
 0x152   : > { %v1555_v38 = vsel %vm1310_vm4, %v1471_v36, 0.0 }
 0x154   : > { %1369 = vadd.xlane.f32.xlu1 %v1368_v41  ;;  %v1474_v41 = vmul.f32 %v2666_v0, %v2666_v0 }
 0x155   : > { %1526 = vadd.xlane.f32.xlu0 %v1525_v43  ;;  %v1395_v43 = vsel %vm1310_vm4, %v2668_v8, 0.0 }
 0x156   : > { %v1564_v45 = vsel %vm1310_vm4, %v1474_v41, 0.0 }
 0x158   : > { %1366 = vadd.xlane.f32.xlu1 %v1365_v46  ;;  %v1473_v46 = vmul.f32 %v2668_v8, %v2668_v8 }
 0x159   : > { %1535 = vadd.xlane.f32.xlu0 %v1534_v48  ;;  %v1404_v48 = vsel %vm1310_vm4, %v2675_v17, 0.0 }
 0x15a   : > { %v1561_v50 = vsel %vm1310_vm4, %v1473_v46, 0.0 }
 0x15c   : > { %1375 = vadd.xlane.f32.xlu1 %v1374_v51  ;;  %v1475_v51 = vmul.f32 %v2677_v23, %v2677_v23 }
 0x15d   : > { %1532 = vadd.xlane.f32.xlu0 %v1531_v53  ;;  %v1401_v53 = vsel %vm1310_vm4, %v2677_v23, 0.0 }
 0x160   : > { %1372 = vadd.xlane.f32.xlu1 %v1371_v57  ;;  %v1567_v57 = vsel %vm1310_vm4, %v1475_v51, 0.0 }
 0x161   : > { %1541 = vadd.xlane.f32.xlu0 %v1540_v59  ;;  %v1570_v59 = vsel %vm1310_vm4, %v1476_v54, 0.0 }
 0x164   : > { %1381 = vadd.xlane.f32.xlu1 %v1380_v61 }
 0x165   : > { %1538 = vadd.xlane.f32.xlu0 %v1537_v62 }
 0x168   : > { %1378 = vadd.xlane.f32.xlu1 %v1377_v4 }
 0x169   : > { %1547 = vadd.xlane.f32.xlu0 %v1546_v9 }
 0x16c   : > { %1387 = vadd.xlane.f32.xlu1 %v1386_v11 }
 0x16d   : > { %1544 = vadd.xlane.f32.xlu0 %v1543_v13 }
 0x170   : > { %1384 = vadd.xlane.f32.xlu1 %v1383_v20 }
 0x171   : > { %1553 = vadd.xlane.f32.xlu0 %v1552_v22 }
 0x174   : > { %1393 = vadd.xlane.f32.xlu1 %v1392_v25 }
 0x175   : > { %1550 = vadd.xlane.f32.xlu0 %v1549_v29 }
 0x178   : > { %1390 = vadd.xlane.f32.xlu1 %v1389_v32 }
 0x179   : > { %1559 = vadd.xlane.f32.xlu0 %v1558_v34 }
 0x17c   : > { %1399 = vadd.xlane.f32.xlu1 %v1398_v37 }
 0x17d   : > { %1556 = vadd.xlane.f32.xlu0 %v1555_v38 }
 0x180   : > { %1396 = vadd.xlane.f32.xlu1 %v1395_v43 }
 0x181   : > { %1565 = vadd.xlane.f32.xlu0 %v1564_v45 }
 0x184   : > { %1405 = vadd.xlane.f32.xlu1 %v1404_v48 }
 0x185   : > { %1562 = vadd.xlane.f32.xlu0 %v1561_v50 }
 0x188   : > { %1402 = vadd.xlane.f32.xlu1 %v1401_v53 }
 0x189   : > { %1568 = vadd.xlane.f32.xlu0 %v1567_v57 }
 0x18c   : > { %1571 = vadd.xlane.f32.xlu1 %v1570_v59 }
 0x19a   : > { %v1316_v60 = vpop.xlane.xlu0 %1315 }
 0x19d   : > { %v1479_v61 = vpop.xlane.xlu1 %1478 }
 0x19e   : > { %v1313_v62 = vpop.xlane.xlu0 %1312 }
 0x19f   : > { %v1407_v37 = vadd.f32 %v1316_v60, %v1313_v62 }
 0x1a1   : > { %v1322_v3 = vpop.xlane.xlu1 %1321 }
 0x1a2   : > { %v1482_v4 = vpop.xlane.xlu0 %1481 }
 0x1a3   : > { %v1573_v45 = vadd.f32 %v1482_v4, %v1479_v61 }
 0x1a5   : > { %v1319_v9 = vpop.xlane.xlu1 %1318 }
 0x1a6   : > { %v1488_v10 = vpop.xlane.xlu0 %1487  ;;  %v1408_v41 = vadd.f32 %v1407_v37, %v1319_v9 }
 0x1a8   : > { %v1409_v50 = vadd.f32 %v1408_v41, %v1322_v3 }
 0x1a9   : > { %v1328_v11 = vpop.xlane.xlu1 %1327 }
 0x1aa   : > { %v1485_v13 = vpop.xlane.xlu0 %1484 }
 0x1ab   : > { %v1574_v46 = vadd.f32 %v1573_v45, %v1485_v13 }
 0x1ad   : > { %v1325_v16 = vpop.xlane.xlu1 %1324  ;;  %v1575_v54 = vadd.f32 %v1574_v46, %v1488_v10 }
 0x1ae   : > { %v1494_v20 = vpop.xlane.xlu0 %1493  ;;  %v1410_v53 = vadd.f32 %v1409_v50, %v1325_v16 }
 0x1b0   : > { %v1411_v23 = vadd.f32 %v1410_v53, %v1328_v11 }
 0x1b1   : > { %v1334_v22 = vpop.xlane.xlu1 %1333 }
 0x1b2   : > { %v1491_v24 = vpop.xlane.xlu0 %1490 }
 0x1b3   : > { %v1576_v17 = vadd.f32 %v1575_v54, %v1491_v24 }
 0x1b5   : > { %v1331_v25 = vpop.xlane.xlu1 %1330  ;;  %v1577_v56 = vadd.f32 %v1576_v17, %v1494_v20 }
 0x1b6   : > { %v1500_v29 = vpop.xlane.xlu0 %1499  ;;  %v1412_v8 = vadd.f32 %v1411_v23, %v1331_v25 }
 0x1b8   : > { %v1413_v62 = vadd.f32 %v1412_v8, %v1334_v22 }
 0x1b9   : > { %v1340_v30 = vpop.xlane.xlu1 %1339 }
 0x1ba   : > { %v1497_v32 = vpop.xlane.xlu0 %1496 }
 0x1bb   : > { %v1578_v39 = vadd.f32 %v1577_v56, %v1497_v32 }
 0x1bd   : > { %v1337_v34 = vpop.xlane.xlu1 %1336  ;;  %v1579_v61 = vadd.f32 %v1578_v39, %v1500_v29 }
 0x1be   : > { %v1506_v36 = vpop.xlane.xlu0 %1505  ;;  %v1414_v37 = vadd.f32 %v1413_v62, %v1337_v34 }
 0x1c0   : > { %v1415_v41 = vadd.f32 %v1414_v37, %v1340_v30 }
 0x1c1   : > { %v1346_v38 = vpop.xlane.xlu1 %1345 }
 0x1c2   : > { %v1503_v43 = vpop.xlane.xlu0 %1502 }
 0x1c3   : > { %v1580_v3 = vadd.f32 %v1579_v61, %v1503_v43 }
 0x1c5   : > { %v1343_v48 = vpop.xlane.xlu1 %1342  ;;  %v1581_v46 = vadd.f32 %v1580_v3, %v1506_v36 }
 0x1c6   : > { %v1512_v51 = vpop.xlane.xlu0 %1511  ;;  %v1416_v10 = vadd.f32 %v1415_v41, %v1343_v48 }
 0x1c8   : > { %v1417_v50 = vadd.f32 %v1416_v10, %v1346_v38 }
 0x1c9   : > { %v1352_v57 = vpop.xlane.xlu1 %1351 }
 0x1ca   : > { %v1509_v59 = vpop.xlane.xlu0 %1508 }
 0x1cb   : > { %v1582_v24 = vadd.f32 %v1581_v46, %v1509_v59 }
 0x1cd   : > { %v1349_v0 = vpop.xlane.xlu1 %1348  ;;  %v1583_v17 = vadd.f32 %v1582_v24, %v1512_v51 }
 0x1ce   : > { %v1518_v52 = vpop.xlane.xlu0 %1517  ;;  %v1418_v25 = vadd.f32 %v1417_v50, %v1349_v0 }
 0x1d0   : > { %v1419_v22 = vadd.f32 %v1418_v25, %v1352_v57 }
 0x1d1   : > { %v1358_v60 = vpop.xlane.xlu1 %1357 }
 0x1d2   : > { %v1515_v9 = vpop.xlane.xlu0 %1514 }
 0x1d3   : > { %v1584_v8 = vadd.f32 %v1583_v17, %v1515_v9 }
 0x1d5   : > { %v1355_v4 = vpop.xlane.xlu1 %1354  ;;  %v1585_v34 = vadd.f32 %v1584_v8, %v1518_v52 }
 0x1d6   : > { %v1524_v13 = vpop.xlane.xlu0 %1523  ;;  %v1420_v39 = vadd.f32 %v1419_v22, %v1355_v4 }
 0x1d8   : > { %v1421_v53 = vadd.f32 %v1420_v39, %v1358_v60 }
 0x1d9   : > { %v1364_v16 = vpop.xlane.xlu1 %1363 }
 0x1da   : > { %v1521_v45 = vpop.xlane.xlu0 %1520 }
 0x1db   : > { %v1586_v43 = vadd.f32 %v1585_v34, %v1521_v45 }
 0x1dd   : > { %v1361_v11 = vpop.xlane.xlu1 %1360  ;;  %v1587_v36 = vadd.f32 %v1586_v43, %v1524_v13 }
 0x1de   : > { %v1530_v23 = vpop.xlane.xlu0 %1529  ;;  %v1422_v54 = vadd.f32 %v1421_v53, %v1361_v11 }
 0x1e0   : > { %v1423_v37 = vadd.f32 %v1422_v54, %v1364_v16 }
 0x1e1   : > { %v1370_v56 = vpop.xlane.xlu1 %1369 }
 0x1e2   : > { %v1527_v20 = vpop.xlane.xlu0 %1526 }
 0x1e3   : > { %v1588_v38 = vadd.f32 %v1587_v36, %v1527_v20 }
 0x1e5   : > { %v1367_v32 = vpop.xlane.xlu1 %1366  ;;  %v1589_v3 = vadd.f32 %v1588_v38, %v1530_v23 }
 0x1e6   : > { %v1536_v29 = vpop.xlane.xlu0 %1535  ;;  %v1424_v51 = vadd.f32 %v1423_v37, %v1367_v32 }
 0x1e8   : > { %v1425_v41 = vadd.f32 %v1424_v51, %v1370_v56 }
 0x1e9   : > { %v1376_v30 = vpop.xlane.xlu1 %1375 }
 0x1ea   : > { %v1533_v48 = vpop.xlane.xlu0 %1532 }
 0x1eb   : > { %v1590_v9 = vadd.f32 %v1589_v3, %v1533_v48 }
 0x1ed   : > { %v1373_v59 = vpop.xlane.xlu1 %1372  ;;  %v1591_v52 = vadd.f32 %v1590_v9, %v1536_v29 }
 0x1ee   : > { %v1542_v62 = vpop.xlane.xlu0 %1541  ;;  %v1426_v10 = vadd.f32 %v1425_v41, %v1373_v59 }
 0x1f0   : > { %v1427_v24 = vadd.f32 %v1426_v10, %v1376_v30 }
 0x1f1   : > { %v1382_v0 = vpop.xlane.xlu1 %1381 }
 0x1f2   : > { %v1539_v61 = vpop.xlane.xlu0 %1538 }
 0x1f3   : > { %v1592_v60 = vadd.f32 %v1591_v52, %v1539_v61 }
 0x1f5   : > { %v1379_v57 = vpop.xlane.xlu1 %1378  ;;  %v1593_v25 = vadd.f32 %v1592_v60, %v1542_v62 }
 0x1f6   : > { %v1548_v4 = vpop.xlane.xlu0 %1547  ;;  %v1428_v13 = vadd.f32 %v1427_v24, %v1379_v57 }
 0x1f8   : > { %v1429_v20 = vadd.f32 %v1428_v13, %v1382_v0 }
 0x1f9   : > { %v1388_v45 = vpop.xlane.xlu1 %1387 }
 0x1fa   : > { %v1545_v46 = vpop.xlane.xlu0 %1544 }
 0x1fb   : > { %v1594_v17 = vadd.f32 %v1593_v25, %v1545_v46 }
 0x1fd   : > { %v1385_v11 = vpop.xlane.xlu1 %1384  ;;  %v1595_v23 = vadd.f32 %v1594_v17, %v1548_v4 }
 0x1fe   : > { %v1554_v50 = vpop.xlane.xlu0 %1553  ;;  %v1430_v22 = vadd.f32 %v1429_v20, %v1385_v11 }
 0x200   : > { %v1431_v34 = vadd.f32 %v1430_v22, %v1388_v45 }
 0x201   : > { %v1394_v16 = vpop.xlane.xlu1 %1393 }
 0x202   : > { %v1551_v8 = vpop.xlane.xlu0 %1550 }
 0x203   : > { %v1596_v56 = vadd.f32 %v1595_v23, %v1551_v8 }
 0x205   : > { %v1391_v32 = vpop.xlane.xlu1 %1390  ;;  %v1597_v48 = vadd.f32 %v1596_v56, %v1554_v50 }
 0x206   : > { %v1560_v39 = vpop.xlane.xlu0 %1559  ;;  %v1432_v29 = vadd.f32 %v1431_v34, %v1391_v32 }
 0x208   : > { %v1433_v36 = vadd.f32 %v1432_v29, %v1394_v16 }
 0x209   : > { %v1400_v43 = vpop.xlane.xlu1 %1399 }
 0x20a   : > { %v1557_v53 = vpop.xlane.xlu0 %1556 }
 0x20b   : > { %v1598_v54 = vadd.f32 %v1597_v48, %v1557_v53  ;;  %v1615_v53 = vld [vmem:[%s2878_s2] sm:$0x1] }
 0x20d   : > { %v1397_v30 = vpop.xlane.xlu1 %1396  ;;  %v1599_v37 = vadd.f32 %v1598_v54, %v1560_v39 }
 0x20e   : > { %v1566_v59 = vpop.xlane.xlu0 %1565  ;;  %v1434_v38 = vadd.f32 %v1433_v36, %v1397_v30  ;;  %v1617_v36 = vld [vmem:[%s2879_s3] sm:$0x1] }
 0x210   : > { %v1435_v61 = vadd.f32 %v1434_v38, %v1400_v43  ;;  %v1621_v43 = vlaneseq }
 0x211   : > { %v1406_v62 = vpop.xlane.xlu1 %1405 }
 0x212   : > { %v1563_v51 = vpop.xlane.xlu0 %1562  ;;  %v1622_v29 = vshrl.u32 %v1621_v43, 7 }
 0x213   : > { %v1600_v0 = vadd.f32 %v1599_v37, %v1563_v51 }
 0x214   : > { %v1623_v48 = vsub.s32 0, %v1622_v29 }
 0x215   : > { %v1403_v3 = vpop.xlane.xlu1 %1402  ;;  %v1601_v9 = vadd.f32 %v1600_v0, %v1566_v59 }
 0x216   : > { %v1436_v57 = vadd.f32 %v1435_v61, %v1403_v3  ;;  %v1569_v41 = vpop.xlane.xlu0 %1568 }
 0x217   : > { %v1602_v4 = vadd.f32 %v1601_v9, %v1569_v41 }
 0x218   : > { %v1437_v10 = vadd.f32 %v1436_v57, %v1406_v62 }
 0x219   : > { %v1572_v52 = vpop.xlane.xlu1 %1571 }
 0x21a   : > { %v1438_v45 = vrot.slane %v1437_v10, 4  ;;  %v1603_v46 = vadd.f32 %v1602_v4, %v1572_v52 }
 0x21c   : > { %v1439_v60 = vadd.f32 %v1438_v45, %v1437_v10  ;;  %v1604_v24 = vrot.slane %v1603_v46, 4 }
 0x21e   : > { %v1440_v11 = vrot.slane %v1439_v60, 2  ;;  %v1605_v13 = vadd.f32 %v1604_v24, %v1603_v46  ;;  %v2899_v46 = vld [vmem:[#allocation3_spill] sm:$0xff] }
 0x220   : > { %v1441_v50 = vadd.f32 %v1440_v11, %v1439_v60  ;;  %v1606_v25 = vrot.slane %v1605_v13, 2 }
 0x222   : > { %v1442_v17 = vrot.slane %v1441_v50, 1  ;;  %v1607_v16 = vadd.f32 %v1606_v25, %v1605_v13 }
 0x224   : > { %v1443_v20 = vadd.f32 %v1442_v17, %v1441_v50  ;;  %v1608_v8 = vrot.slane %v1607_v16, 1 }
 0x226   : > { %v1444_v22 = vmul.f32 0.00048828125, %v1443_v20  ;;  %v1609_v23 = vadd.f32 %v1608_v8, %v1607_v16 }
 0x228   : > { %v1611_v32 = vmul.f32 %v1444_v22, %v1444_v22  ;;  %v1610_v39 = vmul.f32 0.00048828125, %v1609_v23 }
 0x22a   : > { %v1612_v56 = vsub.f32 %v1610_v39, %v1611_v32 }
 0x22c   : > { %v1613_v34 = vadd.f32 1e-05, %v1612_v56 }
 0x22e   : > { %2313 = vrsqrt.f32 %v1613_v34 }
 0x238   : > { %v2314_v54 = vpop.eup %2313 }
 0x239   : > { %v1616_v30 = vmul.f32 %v2314_v54, %v1615_v53 }
 0x23b   : > { %v1618_v59 = vmul.f32 %v1616_v30, %v1444_v22  ;;  %v1624_v38 = vrot.slane %v1616_v30, %v1623_v48 }
 0x23d   : > { %v1619_v62 = vsub.f32 %v1617_v36, %v1618_v59  ;;  %v1626_v37 = vmul.f32 %v2541_v1, %v1624_v38  ;;  %v1627_v51 = vmul.f32 %v2539_v63, %v1624_v38  ;;  %v1628_v0 = vmul.f32 %v2549_v7, %v1624_v38 }
 0x23e   : > { %v1629_v61 = vmul.f32 %v2547_v5, %v1624_v38  ;;  %v1630_v3 = vmul.f32 %v2558_v14, %v1624_v38  ;;  %v1631_v9 = vmul.f32 %v2556_v12, %v1624_v38  ;;  %v1632_v57 = vmul.f32 %v2567_v21, %v1624_v38 }
 0x23f   : > { %v1633_v41 = vmul.f32 %v2565_v19, %v1624_v38  ;;  %v1634_v4 = vmul.f32 %v2576_v28, %v1624_v38  ;;  %v1635_v10 = vmul.f32 %v2574_v26, %v1624_v38  ;;  %v1636_v1 = vmul.f32 %v2585_v35, %v1624_v38 }
 0x240   : > { %v1637_v63 = vmul.f32 %v2583_v33, %v1624_v38  ;;  %v1638_v7 = vmul.f32 %v2594_v42, %v1624_v38  ;;  %v1639_v5 = vmul.f32 %v2592_v40, %v1624_v38  ;;  %v1640_v14 = vmul.f32 %v2605_v49, %v1624_v38 }
 0x241   : > { %v1641_v12 = vmul.f32 %v2602_v47, %v1624_v38  ;;  %v1642_v21 = vmul.f32 %v2614_v58, %v1624_v38  ;;  %v1643_v19 = vmul.f32 %v2612_v55, %v1624_v38  ;;  %v1644_v28 = vmul.f32 %v2623_v6, %v1624_v38  ;;  %v2897_v47 = vld [vmem:[#allocation2_spill] sm:$0xff]  ;;  %v2898_v58 = vld [vmem:[#allocation4_spill] sm:$0xff] }
 0x242   : > { %v1645_v26 = vmul.f32 %v2621_v2, %v1624_v38  ;;  %v1646_v35 = vmul.f32 %v2632_v18, %v1624_v38  ;;  %v1647_v33 = vmul.f32 %v2630_v15, %v1624_v38  ;;  %v1648_v42 = vmul.f32 %v2641_v31, %v1624_v38  ;;  %v2900_v2 = vld [vmem:[#allocation6_spill] sm:$0xff]  ;;  %v2901_v15 = vld [vmem:[#allocation5_spill] sm:$0xff] }
 0x243   : > { %v1649_v40 = vmul.f32 %v2639_v27, %v1624_v38  ;;  %v1650_v49 = vmul.f32 %v2650_v44, %v1624_v38  ;;  %v1651_v52 = vmul.f32 %v2897_v47, %v1624_v38  ;;  %v1652_v45 = vmul.f32 %v2898_v58, %v1624_v38  ;;  %v2902_v27 = vld [vmem:[#allocation8_spill] sm:$0xff]  ;;  %v2903_v44 = vld [vmem:[#allocation7_spill] sm:$0xff] }
 0x244   : > { %v1653_v55 = vmul.f32 %v2899_v46, %v1624_v38  ;;  %v1662_v60 = vrot.slane %v1619_v62, %v1623_v48  ;;  %v1654_v6 = vmul.f32 %v2900_v2, %v1624_v38  ;;  %v1655_v18 = vmul.f32 %v2901_v15, %v1624_v38 }
 0x245   : > { %v1656_v31 = vmul.f32 %v2902_v27, %v1624_v38  ;;  %v1657_v24 = vmul.f32 %v2903_v44, %v1624_v38 }
 0x246   : > { %v1664_v11 = vadd.f32 %v1662_v60, %v1626_v37  ;;  %v1665_v13 = vadd.f32 %v1662_v60, %v1627_v51  ;;  %v1666_v50 = vadd.f32 %v1662_v60, %v1628_v0  ;;  %v1667_v25 = vadd.f32 %v1662_v60, %v1629_v61 }
 0x247   : > { %v1668_v17 = vadd.f32 %v1662_v60, %v1630_v3  ;;  %v1669_v16 = vadd.f32 %v1662_v60, %v1631_v9  ;;  %v1670_v20 = vadd.f32 %v1662_v60, %v1632_v57  ;;  %v1671_v8 = vadd.f32 %v1662_v60, %v1633_v41 }
 0x248   : > { %v1672_v22 = vadd.f32 %v1662_v60, %v1634_v4  ;;  %v1673_v23 = vadd.f32 %v1662_v60, %v1635_v10  ;;  %v1674_v32 = vadd.f32 %v1662_v60, %v1636_v1  ;;  %v1675_v39 = vadd.f32 %v1662_v60, %v1637_v63  ;;  %1696 = vst.msk [vmem:[%s2803_s14] sm:$0xff] %vm1310_vm4, %v1664_v11 }
 0x249   : > { %1697 = vst.msk [vmem:[%s2803_s14 + $0x8] sm:$0xff] %vm1310_vm4, %v1665_v13  ;;  %1698 = vst.msk [vmem:[%s2803_s14 + $0x10] sm:$0xff] %vm1310_vm4, %v1666_v50  ;;  %v1676_v56 = vadd.f32 %v1662_v60, %v1638_v7  ;;  %v1677_v34 = vadd.f32 %v1662_v60, %v1639_v5  ;;  %v1678_v43 = vadd.f32 %v1662_v60, %v1640_v14 }
 0x24a   : > { %1699 = vst.msk [vmem:[%s2803_s14 + $0x18] sm:$0xff] %vm1310_vm4, %v1667_v25  ;;  %v1679_v29 = vadd.f32 %v1662_v60, %v1641_v12  ;;  %1700 = vst.msk [vmem:[%s2803_s14 + $0x20] sm:$0xff] %vm1310_vm4, %v1668_v17  ;;  %v1680_v53 = vadd.f32 %v1662_v60, %v1642_v21  ;;  %v1681_v48 = vadd.f32 %v1662_v60, %v1643_v19 }
 0x24b   : > { %1701 = vst.msk [vmem:[%s2803_s14 + $0x28] sm:$0xff] %vm1310_vm4, %v1669_v16  ;;  %1702 = vst.msk [vmem:[%s2803_s14 + $0x30] sm:$0xff] %vm1310_vm4, %v1670_v20  ;;  %v1682_v54 = vadd.f32 %v1662_v60, %v1644_v28  ;;  %v1683_v30 = vadd.f32 %v1662_v60, %v1645_v26  ;;  %v1684_v36 = vadd.f32 %v1662_v60, %v1646_v35 }
 0x24c   : > { %1703 = vst.msk [vmem:[%s2803_s14 + $0x38] sm:$0xff] %vm1310_vm4, %v1671_v8  ;;  %1704 = vst.msk [vmem:[%s2803_s14 + $0x40] sm:$0xff] %vm1310_vm4, %v1672_v22  ;;  %v1685_v59 = vadd.f32 %v1662_v60, %v1647_v33  ;;  %v1686_v38 = vadd.f32 %v1662_v60, %v1648_v42  ;;  %v1687_v62 = vadd.f32 %v1662_v60, %v1649_v40 }
 0x24d   : > { %1705 = vst.msk [vmem:[%s2803_s14 + $0x48] sm:$0xff] %vm1310_vm4, %v1673_v23  ;;  %1706 = vst.msk [vmem:[%s2803_s14 + $0x50] sm:$0xff] %vm1310_vm4, %v1674_v32  ;;  %v1688_v37 = vadd.f32 %v1662_v60, %v1650_v49  ;;  %v1689_v51 = vadd.f32 %v1662_v60, %v1651_v52  ;;  %v1690_v0 = vadd.f32 %v1662_v60, %v1652_v45 }
 0x24e   : > { %1707 = vst.msk [vmem:[%s2803_s14 + $0x58] sm:$0xff] %vm1310_vm4, %v1675_v39  ;;  %1708 = vst.msk [vmem:[%s2803_s14 + $0x60] sm:$0xff] %vm1310_vm4, %v1676_v56  ;;  %v1691_v61 = vadd.f32 %v1662_v60, %v1653_v55  ;;  %v1692_v3 = vadd.f32 %v1662_v60, %v1654_v6  ;;  %v1693_v9 = vadd.f32 %v1662_v60, %v1655_v18 }
 0x24f   : > { %1709 = vst.msk [vmem:[%s2803_s14 + $0x68] sm:$0xff] %vm1310_vm4, %v1677_v34  ;;  %1710 = vst.msk [vmem:[%s2803_s14 + $0x70] sm:$0xff] %vm1310_vm4, %v1678_v43  ;;  %v1694_v57 = vadd.f32 %v1662_v60, %v1656_v31  ;;  %v1695_v41 = vadd.f32 %v1662_v60, %v1657_v24 }
 0x250   : > { %1711 = vst.msk [vmem:[%s2803_s14 + $0x78] sm:$0xff] %vm1310_vm4, %v1679_v29  ;;  %1712 = vst.msk [vmem:[%s2803_s14 + $0x80] sm:$0xff] %vm1310_vm4, %v1680_v53 }
 0x251   : > { %1713 = vst.msk [vmem:[%s2803_s14 + $0x88] sm:$0xff] %vm1310_vm4, %v1681_v48  ;;  %1714 = vst.msk [vmem:[%s2803_s14 + $0x90] sm:$0xff] %vm1310_vm4, %v1682_v54 }
 0x252   : > { %1715 = vst.msk [vmem:[%s2803_s14 + $0x98] sm:$0xff] %vm1310_vm4, %v1683_v30  ;;  %1716 = vst.msk [vmem:[%s2803_s14 + $0xa0] sm:$0xff] %vm1310_vm4, %v1684_v36 }
 0x253   : > { %1717 = vst.msk [vmem:[%s2803_s14 + $0xa8] sm:$0xff] %vm1310_vm4, %v1685_v59  ;;  %1718 = vst.msk [vmem:[%s2803_s14 + $0xb0] sm:$0xff] %vm1310_vm4, %v1686_v38 }
 0x254   : > { %1719 = vst.msk [vmem:[%s2803_s14 + $0xb8] sm:$0xff] %vm1310_vm4, %v1687_v62  ;;  %1720 = vst.msk [vmem:[%s2803_s14 + $0xc0] sm:$0xff] %vm1310_vm4, %v1688_v37 }
 0x255   : > { %1721 = vst.msk [vmem:[%s2803_s14 + $0xc8] sm:$0xff] %vm1310_vm4, %v1689_v51  ;;  %1722 = vst.msk [vmem:[%s2803_s14 + $0xd0] sm:$0xff] %vm1310_vm4, %v1690_v0 }
 0x256   : > { %1723 = vst.msk [vmem:[%s2803_s14 + $0xd8] sm:$0xff] %vm1310_vm4, %v1691_v61  ;;  %1724 = vst.msk [vmem:[%s2803_s14 + $0xe0] sm:$0xff] %vm1310_vm4, %v1692_v3 }
 0x257   : > { %1725 = vst.msk [vmem:[%s2803_s14 + $0xe8] sm:$0xff] %vm1310_vm4, %v1693_v9  ;;  %1726 = vst.msk [vmem:[%s2803_s14 + $0xf0] sm:$0xff] %vm1310_vm4, %v1694_v57 }
 0x258   : > { %1727 = vst.msk [vmem:[%s2803_s14 + $0xf8] sm:$0xff] %vm1310_vm4, %v1695_v41 }
 0x259 PF: > { %s14_s15 = sadd.s32 1, %s2321_s15  }
 0x25a   : > { %p11_p4 = scmp.ge.s32.totalorder %s14_s15, 4  }
 0x25c   :  { %13 = sbr.rel (!%p11_p4) target bundleno = 1 (0x1), region = 70 }

</bundles_post_ra>
